<compile_context>
chip_gen: v5e
topology: v5e:2x2
jax: 0.10.0
libtpu: 0.0.40
codegen_flags: <defaults>
</compile_context>

<pallas_src>
import math
import functools

import jax
import jax.numpy as jnp
from jax.experimental import pallas as pl
from jax.experimental.pallas import tpu as pltpu

# ------------------------- tiny synthetic BERT config -------------------------
VOCAB = 100
HIDDEN = 32
LAYERS = 2
HEADS = 2
HEAD_DIM = HIDDEN // HEADS
INTERMEDIATE = 64
MAX_POS = 16
NUM_LABELS = 2
LN_EPS = 1e-12

# ------------------------- packed-parameter slab layout ------------------------
# Per-layer slab, shape (LAYERS, 64, 512), each weight starts at a 128-lane boundary:
#   rows 0:32 , cols   0: 96   fused QKV weight [in, 3*out]  (softmax scale folded into Q)
#   rows 0:32 , cols 128:160   attention output weight [in, out]
#   rows 0:32 , cols 256:320   MLP up-projection weight [in, out]
#   rows 0:64 , cols 384:416   MLP down-projection weight [in, out]
#   rows 32:40, cols 0:...     per-layer bias / LayerNorm vectors (one sublane row each)
QKV_W_COL, O_W_COL, I_W_COL, OUT_W_COL = 0, 128, 256, 384
L_SLAB_ROWS, L_SLAB_COLS = 64, 512
(ROW_QKV_B, ROW_O_B, ROW_LN1_G, ROW_LN1_B,
 ROW_I_B, ROW_OUT_B, ROW_LN2_G, ROW_LN2_B) = range(HIDDEN, HIDDEN + 8)

# Head slab, shape (40, 128): pooler / classifier weights + embedding-LN / bias vectors.
H_SLAB_ROWS, H_SLAB_COLS = 40, 128
CLS_W_COL = 64
(ROW_EMB_LN_G, ROW_EMB_LN_B, ROW_POOL_B, ROW_CLS_B) = range(HIDDEN, HIDDEN + 4)


# --------------------------- fused forward Pallas kernel -----------------------
def _bert_forward_kernel(emb_ref, mask_ref, layer_ref, head_ref, logits_ref, *, batch, seq):
    """Whole BERT forward; the (batch*seq, HIDDEN) activation slab stays in vregs/VMEM."""

    def layer_norm(x, g, b):
        # Single-pass moments: E[x] and E[x^2] are independent reductions, var = E[x^2]-E[x]^2.
        mean = jnp.mean(x, axis=-1, keepdims=True)
        mean_sq = jnp.mean(x * x, axis=-1, keepdims=True)
        var = mean_sq - mean * mean
        return (x - mean) * jax.lax.rsqrt(var + LN_EPS) * g + b

    def gelu(y):
        # TODO(synk): HF BERT uses exact erf-GELU; tanh approximation kept for robust Mosaic lowering.
        return 0.5 * y * (1.0 + jnp.tanh(0.7978845608028654 * (y + 0.044715 * y * y * y)))

    mask = mask_ref[...]                              # (B*S, B*S) additive: block-diag + key padding

    # Embedding layer norm (token gather + pos/type add done in XLA, result passed in).
    h = layer_norm(emb_ref[...],
                   head_ref[ROW_EMB_LN_G:ROW_EMB_LN_G + 1, 0:HIDDEN],
                   head_ref[ROW_EMB_LN_B:ROW_EMB_LN_B + 1, 0:HIDDEN])          # (B*S, H)

    for l in range(LAYERS):
        lw = layer_ref.at[l]                          # (64, 512) per-layer slab view (no load)

        # --- fused QKV projection (1/sqrt(D) scale already folded into Q weights) ---
        qkv = (jnp.dot(h, lw[0:HIDDEN, QKV_W_COL:QKV_W_COL + 3 * HIDDEN],
                       preferred_element_type=jnp.float32)
               + lw[ROW_QKV_B:ROW_QKV_B + 1, 0:3 * HIDDEN])                    # (B*S, 3H) SSA value

        # --- attention: one (B*S, B*S) score matrix per head; mask forbids cross-batch ---
        ctx_heads = []
        for hh in range(HEADS):
            c0 = hh * HEAD_DIM
            q = qkv[:, c0:c0 + HEAD_DIM]
            k = qkv[:, HIDDEN + c0:HIDDEN + c0 + HEAD_DIM]
            v = qkv[:, 2 * HIDDEN + c0:2 * HIDDEN + c0 + HEAD_DIM]
            s = jax.lax.dot_general(q, k, (((1,), (1,)), ((), ())),
                                    preferred_element_type=jnp.float32) + mask
            s = s - jnp.max(s, axis=-1, keepdims=True)
            p = jnp.exp(s)
            p = p * pl.reciprocal(jnp.sum(p, axis=-1, keepdims=True), approx=True)
            ctx_heads.append(jnp.dot(p, v, preferred_element_type=jnp.float32))
        ctx = jnp.concatenate(ctx_heads, axis=1)                               # (B*S, H), in vregs

        # --- attention output projection + residual + LN1 (fused) ---
        attn_out = (jnp.dot(ctx, lw[0:HIDDEN, O_W_COL:O_W_COL + HIDDEN],
                            preferred_element_type=jnp.float32)
                    + lw[ROW_O_B:ROW_O_B + 1, 0:HIDDEN])
        h = layer_norm(attn_out + h,
                       lw[ROW_LN1_G:ROW_LN1_G + 1, 0:HIDDEN],
                       lw[ROW_LN1_B:ROW_LN1_B + 1, 0:HIDDEN])

        # --- MLP (up-proj + GELU, down-proj) + residual + LN2 (fused) ---
        inter = gelu(jnp.dot(h, lw[0:HIDDEN, I_W_COL:I_W_COL + INTERMEDIATE],
                             preferred_element_type=jnp.float32)
                     + lw[ROW_I_B:ROW_I_B + 1, 0:INTERMEDIATE])
        mlp_out = (jnp.dot(inter, lw[0:INTERMEDIATE, OUT_W_COL:OUT_W_COL + HIDDEN],
                           preferred_element_type=jnp.float32)
                   + lw[ROW_OUT_B:ROW_OUT_B + 1, 0:HIDDEN])
        h = layer_norm(mlp_out + h,
                       lw[ROW_LN2_G:ROW_LN2_G + 1, 0:HIDDEN],
                       lw[ROW_LN2_B:ROW_LN2_B + 1, 0:HIDDEN])

    # --- pooler (tanh) + classifier on the CLS (token-0) rows only ---
    cls_rows = jnp.concatenate([h[bb * seq:bb * seq + 1, :] for bb in range(batch)], axis=0)  # (B, H)
    pooled = jnp.tanh(jnp.dot(cls_rows, head_ref[0:HIDDEN, 0:HIDDEN],
                              preferred_element_type=jnp.float32)
                      + head_ref[ROW_POOL_B:ROW_POOL_B + 1, 0:HIDDEN])
    logits_ref[...] = (jnp.dot(pooled, head_ref[0:HIDDEN, CLS_W_COL:CLS_W_COL + NUM_LABELS],
                               preferred_element_type=jnp.float32)
                       + head_ref[ROW_CLS_B:ROW_CLS_B + 1, 0:NUM_LABELS])


# ------------------------------- wrapper / glue --------------------------------
def bert_classifier_forward(packed, input_ids, attention_mask):
    B, S = input_ids.shape

    # Embedding gather + position/type add (data-dependent gather stays in XLA).
    emb = (packed["word_emb"][input_ids]
           + packed["pos_emb"][:S][None, :, :]
           + packed["type_emb"][0][None, None, :])               # token_type_ids = 0
    emb = emb.reshape(B * S, HIDDEN).astype(jnp.float32)

    # Additive (B*S, B*S) mask: block-diagonal (no cross-batch attention) AND key padding.
    key_ok = attention_mask.astype(jnp.float32)                  # (B, S)
    same_batch = jnp.eye(B, dtype=jnp.float32)                   # (B, B)
    allowed = same_batch[:, None, :, None] * key_ok[None, None, :, :]   # (B,1,B,S)
    allowed = jnp.broadcast_to(allowed, (B, S, B, S)).reshape(B * S, B * S)
    mask_add = (1.0 - allowed) * -1e9

    vmem = pl.BlockSpec(memory_space=pltpu.MemorySpace.VMEM)     # whole array resident in VMEM
    kernel = functools.partial(_bert_forward_kernel, batch=B, seq=S)

    # Gridless single call: all params + activations (<300 KB) resident in VMEM, 4 input DMAs.
    # TODO(synk): if run with a large batch on v7x, add a leading "parallel" grid axis over
    # batch so work shards across both TensorCores; pointless at B=2.
    logits = pl.pallas_call(
        kernel,
        out_shape=jax.ShapeDtypeStruct((B, NUM_LABELS), jnp.float32),
        in_specs=[vmem] * 4,
        out_specs=vmem,
    )(emb, mask_add, packed["layer_slab"], packed["head_slab"])

    # nn.Dropout(0.6) from the PyTorch classifier head is identity in eval/inference.
    return logits


# --------------------------- deterministic parameters --------------------------
def init_params(key):
    """Parameters in PyTorch nn.Linear convention: weight = [out_features, in_features]."""
    def nrm(k, shape, scale=0.02):
        return (scale * jax.random.normal(k, shape)).astype(jnp.float32)

    keys = jax.random.split(key, 8 + LAYERS)
    params = {
        "word_emb": nrm(keys[0], (VOCAB, HIDDEN)),
        "pos_emb": nrm(keys[1], (MAX_POS, HIDDEN)),
        "type_emb": nrm(keys[2], (2, HIDDEN)),
        "emb_ln_g": jnp.ones((HIDDEN,), jnp.float32),
        "emb_ln_b": jnp.zeros((HIDDEN,), jnp.float32),
        "pooler_w": nrm(keys[3], (HIDDEN, HIDDEN)),
        "pooler_b": jnp.zeros((HIDDEN,), jnp.float32),
        "cls_w": nrm(keys[4], (NUM_LABELS, HIDDEN)),
        "cls_b": jnp.zeros((NUM_LABELS,), jnp.float32),
        "layers": [],
    }
    for li in range(LAYERS):
        lk = jax.random.split(keys[8 + li], 6)
        params["layers"].append({
            "q_w": nrm(lk[0], (HIDDEN, HIDDEN)), "q_b": jnp.zeros((HIDDEN,), jnp.float32),
            "k_w": nrm(lk[1], (HIDDEN, HIDDEN)), "k_b": jnp.zeros((HIDDEN,), jnp.float32),
            "v_w": nrm(lk[2], (HIDDEN, HIDDEN)), "v_b": jnp.zeros((HIDDEN,), jnp.float32),
            "o_w": nrm(lk[3], (HIDDEN, HIDDEN)), "o_b": jnp.zeros((HIDDEN,), jnp.float32),
            "ln1_g": jnp.ones((HIDDEN,), jnp.float32), "ln1_b": jnp.zeros((HIDDEN,), jnp.float32),
            "i_w": nrm(lk[4], (INTERMEDIATE, HIDDEN)), "i_b": jnp.zeros((INTERMEDIATE,), jnp.float32),
            "out_w": nrm(lk[5], (HIDDEN, INTERMEDIATE)), "out_b": jnp.zeros((HIDDEN,), jnp.float32),
            "ln2_g": jnp.ones((HIDDEN,), jnp.float32), "ln2_b": jnp.zeros((HIDDEN,), jnp.float32),
        })
    return params


def pack_params(params):
    """One-time repack (outside jit): transpose PyTorch [out,in] weights to [in,out], fuse
    QKV (folding the 1/sqrt(HEAD_DIM) softmax scale into Q), and pack everything into two
    lane-tile-aligned slabs so the kernel entry costs 4 DMAs instead of 20."""
    def T(w):
        return jnp.asarray(w, jnp.float32).T

    scale = 1.0 / math.sqrt(HEAD_DIM)

    layer_slab = jnp.zeros((LAYERS, L_SLAB_ROWS, L_SLAB_COLS), jnp.float32)
    for l, lp in enumerate(params["layers"]):
        qkv_w = jnp.concatenate([T(lp["q_w"]) * scale, T(lp["k_w"]), T(lp["v_w"])], axis=1)
        qkv_b = jnp.concatenate([lp["q_b"] * scale, lp["k_b"], lp["v_b"]])
        layer_slab = layer_slab.at[l, 0:HIDDEN, QKV_W_COL:QKV_W_COL + 3 * HIDDEN].set(qkv_w)
        layer_slab = layer_slab.at[l, ROW_QKV_B, 0:3 * HIDDEN].set(qkv_b)
        layer_slab = layer_slab.at[l, 0:HIDDEN, O_W_COL:O_W_COL + HIDDEN].set(T(lp["o_w"]))
        layer_slab = layer_slab.at[l, ROW_O_B, 0:HIDDEN].set(lp["o_b"])
        layer_slab = layer_slab.at[l, ROW_LN1_G, 0:HIDDEN].set(lp["ln1_g"])
        layer_slab = layer_slab.at[l, ROW_LN1_B, 0:HIDDEN].set(lp["ln1_b"])
        layer_slab = layer_slab.at[l, 0:HIDDEN, I_W_COL:I_W_COL + INTERMEDIATE].set(T(lp["i_w"]))
        layer_slab = layer_slab.at[l, ROW_I_B, 0:INTERMEDIATE].set(lp["i_b"])
        layer_slab = layer_slab.at[l, 0:INTERMEDIATE, OUT_W_COL:OUT_W_COL + HIDDEN].set(T(lp["out_w"]))
        layer_slab = layer_slab.at[l, ROW_OUT_B, 0:HIDDEN].set(lp["out_b"])
        layer_slab = layer_slab.at[l, ROW_LN2_G, 0:HIDDEN].set(lp["ln2_g"])
        layer_slab = layer_slab.at[l, ROW_LN2_B, 0:HIDDEN].set(lp["ln2_b"])

    head_slab = jnp.zeros((H_SLAB_ROWS, H_SLAB_COLS), jnp.float32)
    head_slab = head_slab.at[0:HIDDEN, 0:HIDDEN].set(T(params["pooler_w"]))
    head_slab = head_slab.at[0:HIDDEN, CLS_W_COL:CLS_W_COL + NUM_LABELS].set(T(params["cls_w"]))
    head_slab = head_slab.at[ROW_EMB_LN_G, 0:HIDDEN].set(params["emb_ln_g"])
    head_slab = head_slab.at[ROW_EMB_LN_B, 0:HIDDEN].set(params["emb_ln_b"])
    head_slab = head_slab.at[ROW_POOL_B, 0:HIDDEN].set(params["pooler_b"])
    head_slab = head_slab.at[ROW_CLS_B, 0:NUM_LABELS].set(params["cls_b"])

    return {
        "word_emb": params["word_emb"],
        "pos_emb": params["pos_emb"],
        "type_emb": params["type_emb"],
        "layer_slab": layer_slab,
        "head_slab": head_slab,
    }


if __name__ == "__main__":
    key = jax.random.PRNGKey(0)
    pkey, ikey = jax.random.split(key)
    params = init_params(pkey)
    packed = pack_params(params)          # one-time weight repack (outside jit)

    B, S = 2, 8
    input_ids = jax.random.randint(ikey, (B, S), 0, VOCAB, dtype=jnp.int32)
    attention_mask = jnp.array([[1, 1, 1, 1, 1, 1, 1, 1],
                                [1, 1, 1, 1, 1, 0, 0, 0]], dtype=jnp.int32)

    forward = jax.jit(bert_classifier_forward)
    logits = forward(packed, input_ids, attention_mask)
    jax.block_until_ready(logits)
    assert logits.shape == (B, NUM_LABELS) and logits.dtype == jnp.float32
    print("KERNEL_OK")
</pallas_src>

<mosaic_0001>
module attributes {stable_mosaic.version = 11 : i64} {
  func.func @_bert_forward_kernel(%arg0: memref<16x32xf32, #tpu.memory_space<vmem>>, %arg1: memref<16x16xf32, #tpu.memory_space<vmem>>, %arg2: memref<2x64x512xf32, #tpu.memory_space<vmem>>, %arg3: memref<40x128xf32, #tpu.memory_space<vmem>>, %arg4: memref<2x2xf32, #tpu.memory_space<vmem>>) attributes {dimension_semantics = [], scalar_prefetch = 0 : i64, scratch_operands = 0 : i64, tpu.core_type = #tpu.core_type<tc>} {
    %c0 = arith.constant 0 : index
    %c0_0 = arith.constant 0 : index
    %0 = vector.load %arg1[%c0, %c0_0] : memref<16x16xf32, #tpu.memory_space<vmem>>, vector<16x16xf32>
    %c0_1 = arith.constant 0 : index
    %c0_2 = arith.constant 0 : index
    %1 = vector.load %arg0[%c0_1, %c0_2] : memref<16x32xf32, #tpu.memory_space<vmem>>, vector<16x32xf32>
    %c32 = arith.constant 32 : index
    %c0_3 = arith.constant 0 : index
    %2 = vector.load %arg3[%c32, %c0_3] : memref<40x128xf32, #tpu.memory_space<vmem>>, vector<1x32xf32>
    %c33 = arith.constant 33 : index
    %c0_4 = arith.constant 0 : index
    %3 = vector.load %arg3[%c33, %c0_4] : memref<40x128xf32, #tpu.memory_space<vmem>>, vector<1x32xf32>
    %cst = arith.constant dense<0.000000e+00> : vector<16xf32>
    %4 = vector.multi_reduction <add>, %1, %cst [1] : vector<16x32xf32> to vector<16xf32>
    %5 = vector.shape_cast %4 : vector<16xf32> to vector<16x1xf32>
    %cst_5 = arith.constant 3.200000e+01 : f32
    %6 = vector.broadcast %cst_5 : f32 to vector<16x1xf32>
    %7 = arith.divf %5, %6 : vector<16x1xf32>
    %8 = arith.mulf %1, %1 : vector<16x32xf32>
    %cst_6 = arith.constant dense<0.000000e+00> : vector<16xf32>
    %9 = vector.multi_reduction <add>, %8, %cst_6 [1] : vector<16x32xf32> to vector<16xf32>
    %10 = vector.shape_cast %9 : vector<16xf32> to vector<16x1xf32>
    %cst_7 = arith.constant 3.200000e+01 : f32
    %11 = vector.broadcast %cst_7 : f32 to vector<16x1xf32>
    %12 = arith.divf %10, %11 : vector<16x1xf32>
    %13 = arith.mulf %7, %7 : vector<16x1xf32>
    %14 = arith.subf %12, %13 : vector<16x1xf32>
    %15 = vector.broadcast %7 : vector<16x1xf32> to vector<16x32xf32>
    %16 = arith.subf %1, %15 : vector<16x32xf32>
    %cst_8 = arith.constant 9.99999996E-13 : f32
    %17 = vector.broadcast %cst_8 : f32 to vector<16x1xf32>
    %18 = arith.addf %14, %17 : vector<16x1xf32>
    %19 = math.rsqrt %18 : vector<16x1xf32>
    %20 = vector.broadcast %19 : vector<16x1xf32> to vector<16x32xf32>
    %21 = arith.mulf %16, %20 : vector<16x32xf32>
    %22 = vector.broadcast %2 : vector<1x32xf32> to vector<16x32xf32>
    %23 = arith.mulf %21, %22 : vector<16x32xf32>
    %24 = vector.broadcast %3 : vector<1x32xf32> to vector<16x32xf32>
    %25 = arith.addf %23, %24 : vector<16x32xf32>
    %c0_i32 = arith.constant 0 : i32
    %c0_i32_9 = arith.constant 0 : i32
    %c0_i32_10 = arith.constant 0 : i32
    %26 = tpu.memref_slice %arg2[%c0_i32, %c0_i32_9, %c0_i32_10] : memref<2x64x512xf32, #tpu.memory_space<vmem>> -> memref<1x64x512xf32, #tpu.memory_space<vmem>>
    %27 = tpu.memref_squeeze %26 : memref<1x64x512xf32, #tpu.memory_space<vmem>> -> memref<64x512xf32, #tpu.memory_space<vmem>>
    %c0_11 = arith.constant 0 : index
    %c0_12 = arith.constant 0 : index
    %28 = vector.load %27[%c0_11, %c0_12] : memref<64x512xf32, #tpu.memory_space<vmem>>, vector<32x96xf32>
    %cst_13 = arith.constant dense<0.000000e+00> : vector<16x96xf32>
    %29 = tpu.matmul %25, %28, %cst_13 {dimension_numbers = #tpu.dot_dimension_numbers<[1], [0], [0], [1], [0, 0, 1, 1], [], []>} : vector<16x32xf32>, vector<32x96xf32>, vector<16x96xf32> -> vector<16x96xf32>
    %c0_i32_14 = arith.constant 0 : i32
    %c0_i32_15 = arith.constant 0 : i32
    %c0_i32_16 = arith.constant 0 : i32
    %30 = tpu.memref_slice %arg2[%c0_i32_14, %c0_i32_15, %c0_i32_16] : memref<2x64x512xf32, #tpu.memory_space<vmem>> -> memref<1x64x512xf32, #tpu.memory_space<vmem>>
    %31 = tpu.memref_squeeze %30 : memref<1x64x512xf32, #tpu.memory_space<vmem>> -> memref<64x512xf32, #tpu.memory_space<vmem>>
    %c32_17 = arith.constant 32 : index
    %c0_18 = arith.constant 0 : index
    %32 = vector.load %31[%c32_17, %c0_18] : memref<64x512xf32, #tpu.memory_space<vmem>>, vector<1x96xf32>
    %33 = vector.broadcast %32 : vector<1x96xf32> to vector<16x96xf32>
    %34 = arith.addf %29, %33 : vector<16x96xf32>
    %35 = vector.extract_strided_slice %34 {offsets = [0, 0], sizes = [16, 16], strides = [1, 1]} : vector<16x96xf32> to vector<16x16xf32>
    %36 = vector.extract_strided_slice %34 {offsets = [0, 32], sizes = [16, 16], strides = [1, 1]} : vector<16x96xf32> to vector<16x16xf32>
    %37 = vector.extract_strided_slice %34 {offsets = [0, 64], sizes = [16, 16], strides = [1, 1]} : vector<16x96xf32> to vector<16x16xf32>
    %cst_19 = arith.constant dense<0.000000e+00> : vector<16x16xf32>
    %38 = tpu.matmul %35, %36, %cst_19 {dimension_numbers = #tpu.dot_dimension_numbers<[1], [1], [0], [0], [0, 0, 1, 0], [], []>} : vector<16x16xf32>, vector<16x16xf32>, vector<16x16xf32> -> vector<16x16xf32>
    %39 = arith.addf %38, %0 : vector<16x16xf32>
    %cst_20 = arith.constant dense<0xFF800000> : vector<16xf32>
    %40 = vector.multi_reduction <maximumf>, %39, %cst_20 [1] : vector<16x16xf32> to vector<16xf32>
    %41 = vector.shape_cast %40 : vector<16xf32> to vector<16x1xf32>
    %42 = vector.broadcast %41 : vector<16x1xf32> to vector<16x16xf32>
    %43 = arith.subf %39, %42 : vector<16x16xf32>
    %44 = math.exp %43 : vector<16x16xf32>
    %cst_21 = arith.constant dense<0.000000e+00> : vector<16xf32>
    %45 = vector.multi_reduction <add>, %44, %cst_21 [1] : vector<16x16xf32> to vector<16xf32>
    %46 = vector.shape_cast %45 : vector<16xf32> to vector<16x1xf32>
    %47 = tpu.reciprocal %46 {approx = true} : vector<16x1xf32> -> vector<16x1xf32>
    %48 = vector.broadcast %47 : vector<16x1xf32> to vector<16x16xf32>
    %49 = arith.mulf %44, %48 : vector<16x16xf32>
    %cst_22 = arith.constant dense<0.000000e+00> : vector<16x16xf32>
    %50 = tpu.matmul %49, %37, %cst_22 {dimension_numbers = #tpu.dot_dimension_numbers<[1], [0], [0], [1], [0, 0, 1, 1], [], []>} : vector<16x16xf32>, vector<16x16xf32>, vector<16x16xf32> -> vector<16x16xf32>
    %51 = vector.extract_strided_slice %34 {offsets = [0, 16], sizes = [16, 16], strides = [1, 1]} : vector<16x96xf32> to vector<16x16xf32>
    %52 = vector.extract_strided_slice %34 {offsets = [0, 48], sizes = [16, 16], strides = [1, 1]} : vector<16x96xf32> to vector<16x16xf32>
    %53 = vector.extract_strided_slice %34 {offsets = [0, 80], sizes = [16, 16], strides = [1, 1]} : vector<16x96xf32> to vector<16x16xf32>
    %cst_23 = arith.constant dense<0.000000e+00> : vector<16x16xf32>
    %54 = tpu.matmul %51, %52, %cst_23 {dimension_numbers = #tpu.dot_dimension_numbers<[1], [1], [0], [0], [0, 0, 1, 0], [], []>} : vector<16x16xf32>, vector<16x16xf32>, vector<16x16xf32> -> vector<16x16xf32>
    %55 = arith.addf %54, %0 : vector<16x16xf32>
    %cst_24 = arith.constant dense<0xFF800000> : vector<16xf32>
    %56 = vector.multi_reduction <maximumf>, %55, %cst_24 [1] : vector<16x16xf32> to vector<16xf32>
    %57 = vector.shape_cast %56 : vector<16xf32> to vector<16x1xf32>
    %58 = vector.broadcast %57 : vector<16x1xf32> to vector<16x16xf32>
    %59 = arith.subf %55, %58 : vector<16x16xf32>
    %60 = math.exp %59 : vector<16x16xf32>
    %cst_25 = arith.constant dense<0.000000e+00> : vector<16xf32>
    %61 = vector.multi_reduction <add>, %60, %cst_25 [1] : vector<16x16xf32> to vector<16xf32>
    %62 = vector.shape_cast %61 : vector<16xf32> to vector<16x1xf32>
    %63 = tpu.reciprocal %62 {approx = true} : vector<16x1xf32> -> vector<16x1xf32>
    %64 = vector.broadcast %63 : vector<16x1xf32> to vector<16x16xf32>
    %65 = arith.mulf %60, %64 : vector<16x16xf32>
    %cst_26 = arith.constant dense<0.000000e+00> : vector<16x16xf32>
    %66 = tpu.matmul %65, %53, %cst_26 {dimension_numbers = #tpu.dot_dimension_numbers<[1], [0], [0], [1], [0, 0, 1, 1], [], []>} : vector<16x16xf32>, vector<16x16xf32>, vector<16x16xf32> -> vector<16x16xf32>
    %67 = tpu.concatenate %50, %66 in 1 : vector<16x16xf32>, vector<16x16xf32> -> vector<16x32xf32>
    %c0_i32_27 = arith.constant 0 : i32
    %c0_i32_28 = arith.constant 0 : i32
    %c0_i32_29 = arith.constant 0 : i32
    %68 = tpu.memref_slice %arg2[%c0_i32_27, %c0_i32_28, %c0_i32_29] : memref<2x64x512xf32, #tpu.memory_space<vmem>> -> memref<1x64x512xf32, #tpu.memory_space<vmem>>
    %69 = tpu.memref_squeeze %68 : memref<1x64x512xf32, #tpu.memory_space<vmem>> -> memref<64x512xf32, #tpu.memory_space<vmem>>
    %c0_30 = arith.constant 0 : index
    %c128 = arith.constant 128 : index
    %70 = vector.load %69[%c0_30, %c128] : memref<64x512xf32, #tpu.memory_space<vmem>>, vector<32x32xf32>
    %cst_31 = arith.constant dense<0.000000e+00> : vector<16x32xf32>
    %71 = tpu.matmul %67, %70, %cst_31 {dimension_numbers = #tpu.dot_dimension_numbers<[1], [0], [0], [1], [0, 0, 1, 1], [], []>} : vector<16x32xf32>, vector<32x32xf32>, vector<16x32xf32> -> vector<16x32xf32>
    %c0_i32_32 = arith.constant 0 : i32
    %c0_i32_33 = arith.constant 0 : i32
    %c0_i32_34 = arith.constant 0 : i32
    %72 = tpu.memref_slice %arg2[%c0_i32_32, %c0_i32_33, %c0_i32_34] : memref<2x64x512xf32, #tpu.memory_space<vmem>> -> memref<1x64x512xf32, #tpu.memory_space<vmem>>
    %73 = tpu.memref_squeeze %72 : memref<1x64x512xf32, #tpu.memory_space<vmem>> -> memref<64x512xf32, #tpu.memory_space<vmem>>
    %c33_35 = arith.constant 33 : index
    %c0_36 = arith.constant 0 : index
    %74 = vector.load %73[%c33_35, %c0_36] : memref<64x512xf32, #tpu.memory_space<vmem>>, vector<1x32xf32>
    %75 = vector.broadcast %74 : vector<1x32xf32> to vector<16x32xf32>
    %76 = arith.addf %71, %75 : vector<16x32xf32>
    %77 = arith.addf %76, %25 : vector<16x32xf32>
    %c0_i32_37 = arith.constant 0 : i32
    %c0_i32_38 = arith.constant 0 : i32
    %c0_i32_39 = arith.constant 0 : i32
    %78 = tpu.memref_slice %arg2[%c0_i32_37, %c0_i32_38, %c0_i32_39] : memref<2x64x512xf32, #tpu.memory_space<vmem>> -> memref<1x64x512xf32, #tpu.memory_space<vmem>>
    %79 = tpu.memref_squeeze %78 : memref<1x64x512xf32, #tpu.memory_space<vmem>> -> memref<64x512xf32, #tpu.memory_space<vmem>>
    %c34 = arith.constant 34 : index
    %c0_40 = arith.constant 0 : index
    %80 = vector.load %79[%c34, %c0_40] : memref<64x512xf32, #tpu.memory_space<vmem>>, vector<1x32xf32>
    %c0_i32_41 = arith.constant 0 : i32
    %c0_i32_42 = arith.constant 0 : i32
    %c0_i32_43 = arith.constant 0 : i32
    %81 = tpu.memref_slice %arg2[%c0_i32_41, %c0_i32_42, %c0_i32_43] : memref<2x64x512xf32, #tpu.memory_space<vmem>> -> memref<1x64x512xf32, #tpu.memory_space<vmem>>
    %82 = tpu.memref_squeeze %81 : memref<1x64x512xf32, #tpu.memory_space<vmem>> -> memref<64x512xf32, #tpu.memory_space<vmem>>
    %c35 = arith.constant 35 : index
    %c0_44 = arith.constant 0 : index
    %83 = vector.load %82[%c35, %c0_44] : memref<64x512xf32, #tpu.memory_space<vmem>>, vector<1x32xf32>
    %cst_45 = arith.constant dense<0.000000e+00> : vector<16xf32>
    %84 = vector.multi_reduction <add>, %77, %cst_45 [1] : vector<16x32xf32> to vector<16xf32>
    %85 = vector.shape_cast %84 : vector<16xf32> to vector<16x1xf32>
    %cst_46 = arith.constant 3.200000e+01 : f32
    %86 = vector.broadcast %cst_46 : f32 to vector<16x1xf32>
    %87 = arith.divf %85, %86 : vector<16x1xf32>
    %88 = arith.mulf %77, %77 : vector<16x32xf32>
    %cst_47 = arith.constant dense<0.000000e+00> : vector<16xf32>
    %89 = vector.multi_reduction <add>, %88, %cst_47 [1] : vector<16x32xf32> to vector<16xf32>
    %90 = vector.shape_cast %89 : vector<16xf32> to vector<16x1xf32>
    %cst_48 = arith.constant 3.200000e+01 : f32
    %91 = vector.broadcast %cst_48 : f32 to vector<16x1xf32>
    %92 = arith.divf %90, %91 : vector<16x1xf32>
    %93 = arith.mulf %87, %87 : vector<16x1xf32>
    %94 = arith.subf %92, %93 : vector<16x1xf32>
    %95 = vector.broadcast %87 : vector<16x1xf32> to vector<16x32xf32>
    %96 = arith.subf %77, %95 : vector<16x32xf32>
    %cst_49 = arith.constant 9.99999996E-13 : f32
    %97 = vector.broadcast %cst_49 : f32 to vector<16x1xf32>
    %98 = arith.addf %94, %97 : vector<16x1xf32>
    %99 = math.rsqrt %98 : vector<16x1xf32>
    %100 = vector.broadcast %99 : vector<16x1xf32> to vector<16x32xf32>
    %101 = arith.mulf %96, %100 : vector<16x32xf32>
    %102 = vector.broadcast %80 : vector<1x32xf32> to vector<16x32xf32>
    %103 = arith.mulf %101, %102 : vector<16x32xf32>
    %104 = vector.broadcast %83 : vector<1x32xf32> to vector<16x32xf32>
    %105 = arith.addf %103, %104 : vector<16x32xf32>
    %c0_i32_50 = arith.constant 0 : i32
    %c0_i32_51 = arith.constant 0 : i32
    %c0_i32_52 = arith.constant 0 : i32
    %106 = tpu.memref_slice %arg2[%c0_i32_50, %c0_i32_51, %c0_i32_52] : memref<2x64x512xf32, #tpu.memory_space<vmem>> -> memref<1x64x512xf32, #tpu.memory_space<vmem>>
    %107 = tpu.memref_squeeze %106 : memref<1x64x512xf32, #tpu.memory_space<vmem>> -> memref<64x512xf32, #tpu.memory_space<vmem>>
    %c0_53 = arith.constant 0 : index
    %c256 = arith.constant 256 : index
    %108 = vector.load %107[%c0_53, %c256] : memref<64x512xf32, #tpu.memory_space<vmem>>, vector<32x64xf32>
    %cst_54 = arith.constant dense<0.000000e+00> : vector<16x64xf32>
    %109 = tpu.matmul %105, %108, %cst_54 {dimension_numbers = #tpu.dot_dimension_numbers<[1], [0], [0], [1], [0, 0, 1, 1], [], []>} : vector<16x32xf32>, vector<32x64xf32>, vector<16x64xf32> -> vector<16x64xf32>
    %c0_i32_55 = arith.constant 0 : i32
    %c0_i32_56 = arith.constant 0 : i32
    %c0_i32_57 = arith.constant 0 : i32
    %110 = tpu.memref_slice %arg2[%c0_i32_55, %c0_i32_56, %c0_i32_57] : memref<2x64x512xf32, #tpu.memory_space<vmem>> -> memref<1x64x512xf32, #tpu.memory_space<vmem>>
    %111 = tpu.memref_squeeze %110 : memref<1x64x512xf32, #tpu.memory_space<vmem>> -> memref<64x512xf32, #tpu.memory_space<vmem>>
    %c36 = arith.constant 36 : index
    %c0_58 = arith.constant 0 : index
    %112 = vector.load %111[%c36, %c0_58] : memref<64x512xf32, #tpu.memory_space<vmem>>, vector<1x64xf32>
    %113 = vector.broadcast %112 : vector<1x64xf32> to vector<16x64xf32>
    %114 = arith.addf %109, %113 : vector<16x64xf32>
    %cst_59 = arith.constant 5.000000e-01 : f32
    %115 = vector.broadcast %cst_59 : f32 to vector<16x64xf32>
    %116 = arith.mulf %115, %114 : vector<16x64xf32>
    %cst_60 = arith.constant 4.471500e-02 : f32
    %117 = vector.broadcast %cst_60 : f32 to vector<16x64xf32>
    %118 = arith.mulf %117, %114 : vector<16x64xf32>
    %119 = arith.mulf %118, %114 : vector<16x64xf32>
    %120 = arith.mulf %119, %114 : vector<16x64xf32>
    %121 = arith.addf %114, %120 : vector<16x64xf32>
    %cst_61 = arith.constant 0.797884583 : f32
    %122 = vector.broadcast %cst_61 : f32 to vector<16x64xf32>
    %123 = arith.mulf %122, %121 : vector<16x64xf32>
    %124 = math.tanh %123 : vector<16x64xf32>
    %cst_62 = arith.constant 1.000000e+00 : f32
    %125 = vector.broadcast %cst_62 : f32 to vector<16x64xf32>
    %126 = arith.addf %125, %124 : vector<16x64xf32>
    %127 = arith.mulf %116, %126 : vector<16x64xf32>
    %c0_i32_63 = arith.constant 0 : i32
    %c0_i32_64 = arith.constant 0 : i32
    %c0_i32_65 = arith.constant 0 : i32
    %128 = tpu.memref_slice %arg2[%c0_i32_63, %c0_i32_64, %c0_i32_65] : memref<2x64x512xf32, #tpu.memory_space<vmem>> -> memref<1x64x512xf32, #tpu.memory_space<vmem>>
    %129 = tpu.memref_squeeze %128 : memref<1x64x512xf32, #tpu.memory_space<vmem>> -> memref<64x512xf32, #tpu.memory_space<vmem>>
    %c0_66 = arith.constant 0 : index
    %c384 = arith.constant 384 : index
    %130 = vector.load %129[%c0_66, %c384] : memref<64x512xf32, #tpu.memory_space<vmem>>, vector<64x32xf32>
    %cst_67 = arith.constant dense<0.000000e+00> : vector<16x32xf32>
    %131 = tpu.matmul %127, %130, %cst_67 {dimension_numbers = #tpu.dot_dimension_numbers<[1], [0], [0], [1], [0, 0, 1, 1], [], []>} : vector<16x64xf32>, vector<64x32xf32>, vector<16x32xf32> -> vector<16x32xf32>
    %c0_i32_68 = arith.constant 0 : i32
    %c0_i32_69 = arith.constant 0 : i32
    %c0_i32_70 = arith.constant 0 : i32
    %132 = tpu.memref_slice %arg2[%c0_i32_68, %c0_i32_69, %c0_i32_70] : memref<2x64x512xf32, #tpu.memory_space<vmem>> -> memref<1x64x512xf32, #tpu.memory_space<vmem>>
    %133 = tpu.memref_squeeze %132 : memref<1x64x512xf32, #tpu.memory_space<vmem>> -> memref<64x512xf32, #tpu.memory_space<vmem>>
    %c37 = arith.constant 37 : index
    %c0_71 = arith.constant 0 : index
    %134 = vector.load %133[%c37, %c0_71] : memref<64x512xf32, #tpu.memory_space<vmem>>, vector<1x32xf32>
    %135 = vector.broadcast %134 : vector<1x32xf32> to vector<16x32xf32>
    %136 = arith.addf %131, %135 : vector<16x32xf32>
    %137 = arith.addf %136, %105 : vector<16x32xf32>
    %c0_i32_72 = arith.constant 0 : i32
    %c0_i32_73 = arith.constant 0 : i32
    %c0_i32_74 = arith.constant 0 : i32
    %138 = tpu.memref_slice %arg2[%c0_i32_72, %c0_i32_73, %c0_i32_74] : memref<2x64x512xf32, #tpu.memory_space<vmem>> -> memref<1x64x512xf32, #tpu.memory_space<vmem>>
    %139 = tpu.memref_squeeze %138 : memref<1x64x512xf32, #tpu.memory_space<vmem>> -> memref<64x512xf32, #tpu.memory_space<vmem>>
    %c38 = arith.constant 38 : index
    %c0_75 = arith.constant 0 : index
    %140 = vector.load %139[%c38, %c0_75] : memref<64x512xf32, #tpu.memory_space<vmem>>, vector<1x32xf32>
    %c0_i32_76 = arith.constant 0 : i32
    %c0_i32_77 = arith.constant 0 : i32
    %c0_i32_78 = arith.constant 0 : i32
    %141 = tpu.memref_slice %arg2[%c0_i32_76, %c0_i32_77, %c0_i32_78] : memref<2x64x512xf32, #tpu.memory_space<vmem>> -> memref<1x64x512xf32, #tpu.memory_space<vmem>>
    %142 = tpu.memref_squeeze %141 : memref<1x64x512xf32, #tpu.memory_space<vmem>> -> memref<64x512xf32, #tpu.memory_space<vmem>>
    %c39 = arith.constant 39 : index
    %c0_79 = arith.constant 0 : index
    %143 = vector.load %142[%c39, %c0_79] : memref<64x512xf32, #tpu.memory_space<vmem>>, vector<1x32xf32>
    %cst_80 = arith.constant dense<0.000000e+00> : vector<16xf32>
    %144 = vector.multi_reduction <add>, %137, %cst_80 [1] : vector<16x32xf32> to vector<16xf32>
    %145 = vector.shape_cast %144 : vector<16xf32> to vector<16x1xf32>
    %cst_81 = arith.constant 3.200000e+01 : f32
    %146 = vector.broadcast %cst_81 : f32 to vector<16x1xf32>
    %147 = arith.divf %145, %146 : vector<16x1xf32>
    %148 = arith.mulf %137, %137 : vector<16x32xf32>
    %cst_82 = arith.constant dense<0.000000e+00> : vector<16xf32>
    %149 = vector.multi_reduction <add>, %148, %cst_82 [1] : vector<16x32xf32> to vector<16xf32>
    %150 = vector.shape_cast %149 : vector<16xf32> to vector<16x1xf32>
    %cst_83 = arith.constant 3.200000e+01 : f32
    %151 = vector.broadcast %cst_83 : f32 to vector<16x1xf32>
    %152 = arith.divf %150, %151 : vector<16x1xf32>
    %153 = arith.mulf %147, %147 : vector<16x1xf32>
    %154 = arith.subf %152, %153 : vector<16x1xf32>
    %155 = vector.broadcast %147 : vector<16x1xf32> to vector<16x32xf32>
    %156 = arith.subf %137, %155 : vector<16x32xf32>
    %cst_84 = arith.constant 9.99999996E-13 : f32
    %157 = vector.broadcast %cst_84 : f32 to vector<16x1xf32>
    %158 = arith.addf %154, %157 : vector<16x1xf32>
    %159 = math.rsqrt %158 : vector<16x1xf32>
    %160 = vector.broadcast %159 : vector<16x1xf32> to vector<16x32xf32>
    %161 = arith.mulf %156, %160 : vector<16x32xf32>
    %162 = vector.broadcast %140 : vector<1x32xf32> to vector<16x32xf32>
    %163 = arith.mulf %161, %162 : vector<16x32xf32>
    %164 = vector.broadcast %143 : vector<1x32xf32> to vector<16x32xf32>
    %165 = arith.addf %163, %164 : vector<16x32xf32>
    %c1_i32 = arith.constant 1 : i32
    %c0_i32_85 = arith.constant 0 : i32
    %c0_i32_86 = arith.constant 0 : i32
    %166 = tpu.memref_slice %arg2[%c1_i32, %c0_i32_85, %c0_i32_86] : memref<2x64x512xf32, #tpu.memory_space<vmem>> -> memref<1x64x512xf32, #tpu.memory_space<vmem>>
    %167 = tpu.memref_squeeze %166 : memref<1x64x512xf32, #tpu.memory_space<vmem>> -> memref<64x512xf32, #tpu.memory_space<vmem>>
    %c0_87 = arith.constant 0 : index
    %c0_88 = arith.constant 0 : index
    %168 = vector.load %167[%c0_87, %c0_88] : memref<64x512xf32, #tpu.memory_space<vmem>>, vector<32x96xf32>
    %cst_89 = arith.constant dense<0.000000e+00> : vector<16x96xf32>
    %169 = tpu.matmul %165, %168, %cst_89 {dimension_numbers = #tpu.dot_dimension_numbers<[1], [0], [0], [1], [0, 0, 1, 1], [], []>} : vector<16x32xf32>, vector<32x96xf32>, vector<16x96xf32> -> vector<16x96xf32>
    %c1_i32_90 = arith.constant 1 : i32
    %c0_i32_91 = arith.constant 0 : i32
    %c0_i32_92 = arith.constant 0 : i32
    %170 = tpu.memref_slice %arg2[%c1_i32_90, %c0_i32_91, %c0_i32_92] : memref<2x64x512xf32, #tpu.memory_space<vmem>> -> memref<1x64x512xf32, #tpu.memory_space<vmem>>
    %171 = tpu.memref_squeeze %170 : memref<1x64x512xf32, #tpu.memory_space<vmem>> -> memref<64x512xf32, #tpu.memory_space<vmem>>
    %c32_93 = arith.constant 32 : index
    %c0_94 = arith.constant 0 : index
    %172 = vector.load %171[%c32_93, %c0_94] : memref<64x512xf32, #tpu.memory_space<vmem>>, vector<1x96xf32>
    %173 = vector.broadcast %172 : vector<1x96xf32> to vector<16x96xf32>
    %174 = arith.addf %169, %173 : vector<16x96xf32>
    %175 = vector.extract_strided_slice %174 {offsets = [0, 0], sizes = [16, 16], strides = [1, 1]} : vector<16x96xf32> to vector<16x16xf32>
    %176 = vector.extract_strided_slice %174 {offsets = [0, 32], sizes = [16, 16], strides = [1, 1]} : vector<16x96xf32> to vector<16x16xf32>
    %177 = vector.extract_strided_slice %174 {offsets = [0, 64], sizes = [16, 16], strides = [1, 1]} : vector<16x96xf32> to vector<16x16xf32>
    %cst_95 = arith.constant dense<0.000000e+00> : vector<16x16xf32>
    %178 = tpu.matmul %175, %176, %cst_95 {dimension_numbers = #tpu.dot_dimension_numbers<[1], [1], [0], [0], [0, 0, 1, 0], [], []>} : vector<16x16xf32>, vector<16x16xf32>, vector<16x16xf32> -> vector<16x16xf32>
    %179 = arith.addf %178, %0 : vector<16x16xf32>
    %cst_96 = arith.constant dense<0xFF800000> : vector<16xf32>
    %180 = vector.multi_reduction <maximumf>, %179, %cst_96 [1] : vector<16x16xf32> to vector<16xf32>
    %181 = vector.shape_cast %180 : vector<16xf32> to vector<16x1xf32>
    %182 = vector.broadcast %181 : vector<16x1xf32> to vector<16x16xf32>
    %183 = arith.subf %179, %182 : vector<16x16xf32>
    %184 = math.exp %183 : vector<16x16xf32>
    %cst_97 = arith.constant dense<0.000000e+00> : vector<16xf32>
    %185 = vector.multi_reduction <add>, %184, %cst_97 [1] : vector<16x16xf32> to vector<16xf32>
    %186 = vector.shape_cast %185 : vector<16xf32> to vector<16x1xf32>
    %187 = tpu.reciprocal %186 {approx = true} : vector<16x1xf32> -> vector<16x1xf32>
    %188 = vector.broadcast %187 : vector<16x1xf32> to vector<16x16xf32>
    %189 = arith.mulf %184, %188 : vector<16x16xf32>
    %cst_98 = arith.constant dense<0.000000e+00> : vector<16x16xf32>
    %190 = tpu.matmul %189, %177, %cst_98 {dimension_numbers = #tpu.dot_dimension_numbers<[1], [0], [0], [1], [0, 0, 1, 1], [], []>} : vector<16x16xf32>, vector<16x16xf32>, vector<16x16xf32> -> vector<16x16xf32>
    %191 = vector.extract_strided_slice %174 {offsets = [0, 16], sizes = [16, 16], strides = [1, 1]} : vector<16x96xf32> to vector<16x16xf32>
    %192 = vector.extract_strided_slice %174 {offsets = [0, 48], sizes = [16, 16], strides = [1, 1]} : vector<16x96xf32> to vector<16x16xf32>
    %193 = vector.extract_strided_slice %174 {offsets = [0, 80], sizes = [16, 16], strides = [1, 1]} : vector<16x96xf32> to vector<16x16xf32>
    %cst_99 = arith.constant dense<0.000000e+00> : vector<16x16xf32>
    %194 = tpu.matmul %191, %192, %cst_99 {dimension_numbers = #tpu.dot_dimension_numbers<[1], [1], [0], [0], [0, 0, 1, 0], [], []>} : vector<16x16xf32>, vector<16x16xf32>, vector<16x16xf32> -> vector<16x16xf32>
    %195 = arith.addf %194, %0 : vector<16x16xf32>
    %cst_100 = arith.constant dense<0xFF800000> : vector<16xf32>
    %196 = vector.multi_reduction <maximumf>, %195, %cst_100 [1] : vector<16x16xf32> to vector<16xf32>
    %197 = vector.shape_cast %196 : vector<16xf32> to vector<16x1xf32>
    %198 = vector.broadcast %197 : vector<16x1xf32> to vector<16x16xf32>
    %199 = arith.subf %195, %198 : vector<16x16xf32>
    %200 = math.exp %199 : vector<16x16xf32>
    %cst_101 = arith.constant dense<0.000000e+00> : vector<16xf32>
    %201 = vector.multi_reduction <add>, %200, %cst_101 [1] : vector<16x16xf32> to vector<16xf32>
    %202 = vector.shape_cast %201 : vector<16xf32> to vector<16x1xf32>
    %203 = tpu.reciprocal %202 {approx = true} : vector<16x1xf32> -> vector<16x1xf32>
    %204 = vector.broadcast %203 : vector<16x1xf32> to vector<16x16xf32>
    %205 = arith.mulf %200, %204 : vector<16x16xf32>
    %cst_102 = arith.constant dense<0.000000e+00> : vector<16x16xf32>
    %206 = tpu.matmul %205, %193, %cst_102 {dimension_numbers = #tpu.dot_dimension_numbers<[1], [0], [0], [1], [0, 0, 1, 1], [], []>} : vector<16x16xf32>, vector<16x16xf32>, vector<16x16xf32> -> vector<16x16xf32>
    %207 = tpu.concatenate %190, %206 in 1 : vector<16x16xf32>, vector<16x16xf32> -> vector<16x32xf32>
    %c1_i32_103 = arith.constant 1 : i32
    %c0_i32_104 = arith.constant 0 : i32
    %c0_i32_105 = arith.constant 0 : i32
    %208 = tpu.memref_slice %arg2[%c1_i32_103, %c0_i32_104, %c0_i32_105] : memref<2x64x512xf32, #tpu.memory_space<vmem>> -> memref<1x64x512xf32, #tpu.memory_space<vmem>>
    %209 = tpu.memref_squeeze %208 : memref<1x64x512xf32, #tpu.memory_space<vmem>> -> memref<64x512xf32, #tpu.memory_space<vmem>>
    %c0_106 = arith.constant 0 : index
    %c128_107 = arith.constant 128 : index
    %210 = vector.load %209[%c0_106, %c128_107] : memref<64x512xf32, #tpu.memory_space<vmem>>, vector<32x32xf32>
    %cst_108 = arith.constant dense<0.000000e+00> : vector<16x32xf32>
    %211 = tpu.matmul %207, %210, %cst_108 {dimension_numbers = #tpu.dot_dimension_numbers<[1], [0], [0], [1], [0, 0, 1, 1], [], []>} : vector<16x32xf32>, vector<32x32xf32>, vector<16x32xf32> -> vector<16x32xf32>
    %c1_i32_109 = arith.constant 1 : i32
    %c0_i32_110 = arith.constant 0 : i32
    %c0_i32_111 = arith.constant 0 : i32
    %212 = tpu.memref_slice %arg2[%c1_i32_109, %c0_i32_110, %c0_i32_111] : memref<2x64x512xf32, #tpu.memory_space<vmem>> -> memref<1x64x512xf32, #tpu.memory_space<vmem>>
    %213 = tpu.memref_squeeze %212 : memref<1x64x512xf32, #tpu.memory_space<vmem>> -> memref<64x512xf32, #tpu.memory_space<vmem>>
    %c33_112 = arith.constant 33 : index
    %c0_113 = arith.constant 0 : index
    %214 = vector.load %213[%c33_112, %c0_113] : memref<64x512xf32, #tpu.memory_space<vmem>>, vector<1x32xf32>
    %215 = vector.broadcast %214 : vector<1x32xf32> to vector<16x32xf32>
    %216 = arith.addf %211, %215 : vector<16x32xf32>
    %217 = arith.addf %216, %165 : vector<16x32xf32>
    %c1_i32_114 = arith.constant 1 : i32
    %c0_i32_115 = arith.constant 0 : i32
    %c0_i32_116 = arith.constant 0 : i32
    %218 = tpu.memref_slice %arg2[%c1_i32_114, %c0_i32_115, %c0_i32_116] : memref<2x64x512xf32, #tpu.memory_space<vmem>> -> memref<1x64x512xf32, #tpu.memory_space<vmem>>
    %219 = tpu.memref_squeeze %218 : memref<1x64x512xf32, #tpu.memory_space<vmem>> -> memref<64x512xf32, #tpu.memory_space<vmem>>
    %c34_117 = arith.constant 34 : index
    %c0_118 = arith.constant 0 : index
    %220 = vector.load %219[%c34_117, %c0_118] : memref<64x512xf32, #tpu.memory_space<vmem>>, vector<1x32xf32>
    %c1_i32_119 = arith.constant 1 : i32
    %c0_i32_120 = arith.constant 0 : i32
    %c0_i32_121 = arith.constant 0 : i32
    %221 = tpu.memref_slice %arg2[%c1_i32_119, %c0_i32_120, %c0_i32_121] : memref<2x64x512xf32, #tpu.memory_space<vmem>> -> memref<1x64x512xf32, #tpu.memory_space<vmem>>
    %222 = tpu.memref_squeeze %221 : memref<1x64x512xf32, #tpu.memory_space<vmem>> -> memref<64x512xf32, #tpu.memory_space<vmem>>
    %c35_122 = arith.constant 35 : index
    %c0_123 = arith.constant 0 : index
    %223 = vector.load %222[%c35_122, %c0_123] : memref<64x512xf32, #tpu.memory_space<vmem>>, vector<1x32xf32>
    %cst_124 = arith.constant dense<0.000000e+00> : vector<16xf32>
    %224 = vector.multi_reduction <add>, %217, %cst_124 [1] : vector<16x32xf32> to vector<16xf32>
    %225 = vector.shape_cast %224 : vector<16xf32> to vector<16x1xf32>
    %cst_125 = arith.constant 3.200000e+01 : f32
    %226 = vector.broadcast %cst_125 : f32 to vector<16x1xf32>
    %227 = arith.divf %225, %226 : vector<16x1xf32>
    %228 = arith.mulf %217, %217 : vector<16x32xf32>
    %cst_126 = arith.constant dense<0.000000e+00> : vector<16xf32>
    %229 = vector.multi_reduction <add>, %228, %cst_126 [1] : vector<16x32xf32> to vector<16xf32>
    %230 = vector.shape_cast %229 : vector<16xf32> to vector<16x1xf32>
    %cst_127 = arith.constant 3.200000e+01 : f32
    %231 = vector.broadcast %cst_127 : f32 to vector<16x1xf32>
    %232 = arith.divf %230, %231 : vector<16x1xf32>
    %233 = arith.mulf %227, %227 : vector<16x1xf32>
    %234 = arith.subf %232, %233 : vector<16x1xf32>
    %235 = vector.broadcast %227 : vector<16x1xf32> to vector<16x32xf32>
    %236 = arith.subf %217, %235 : vector<16x32xf32>
    %cst_128 = arith.constant 9.99999996E-13 : f32
    %237 = vector.broadcast %cst_128 : f32 to vector<16x1xf32>
    %238 = arith.addf %234, %237 : vector<16x1xf32>
    %239 = math.rsqrt %238 : vector<16x1xf32>
    %240 = vector.broadcast %239 : vector<16x1xf32> to vector<16x32xf32>
    %241 = arith.mulf %236, %240 : vector<16x32xf32>
    %242 = vector.broadcast %220 : vector<1x32xf32> to vector<16x32xf32>
    %243 = arith.mulf %241, %242 : vector<16x32xf32>
    %244 = vector.broadcast %223 : vector<1x32xf32> to vector<16x32xf32>
    %245 = arith.addf %243, %244 : vector<16x32xf32>
    %c1_i32_129 = arith.constant 1 : i32
    %c0_i32_130 = arith.constant 0 : i32
    %c0_i32_131 = arith.constant 0 : i32
    %246 = tpu.memref_slice %arg2[%c1_i32_129, %c0_i32_130, %c0_i32_131] : memref<2x64x512xf32, #tpu.memory_space<vmem>> -> memref<1x64x512xf32, #tpu.memory_space<vmem>>
    %247 = tpu.memref_squeeze %246 : memref<1x64x512xf32, #tpu.memory_space<vmem>> -> memref<64x512xf32, #tpu.memory_space<vmem>>
    %c0_132 = arith.constant 0 : index
    %c256_133 = arith.constant 256 : index
    %248 = vector.load %247[%c0_132, %c256_133] : memref<64x512xf32, #tpu.memory_space<vmem>>, vector<32x64xf32>
    %cst_134 = arith.constant dense<0.000000e+00> : vector<16x64xf32>
    %249 = tpu.matmul %245, %248, %cst_134 {dimension_numbers = #tpu.dot_dimension_numbers<[1], [0], [0], [1], [0, 0, 1, 1], [], []>} : vector<16x32xf32>, vector<32x64xf32>, vector<16x64xf32> -> vector<16x64xf32>
    %c1_i32_135 = arith.constant 1 : i32
    %c0_i32_136 = arith.constant 0 : i32
    %c0_i32_137 = arith.constant 0 : i32
    %250 = tpu.memref_slice %arg2[%c1_i32_135, %c0_i32_136, %c0_i32_137] : memref<2x64x512xf32, #tpu.memory_space<vmem>> -> memref<1x64x512xf32, #tpu.memory_space<vmem>>
    %251 = tpu.memref_squeeze %250 : memref<1x64x512xf32, #tpu.memory_space<vmem>> -> memref<64x512xf32, #tpu.memory_space<vmem>>
    %c36_138 = arith.constant 36 : index
    %c0_139 = arith.constant 0 : index
    %252 = vector.load %251[%c36_138, %c0_139] : memref<64x512xf32, #tpu.memory_space<vmem>>, vector<1x64xf32>
    %253 = vector.broadcast %252 : vector<1x64xf32> to vector<16x64xf32>
    %254 = arith.addf %249, %253 : vector<16x64xf32>
    %cst_140 = arith.constant 5.000000e-01 : f32
    %255 = vector.broadcast %cst_140 : f32 to vector<16x64xf32>
    %256 = arith.mulf %255, %254 : vector<16x64xf32>
    %cst_141 = arith.constant 4.471500e-02 : f32
    %257 = vector.broadcast %cst_141 : f32 to vector<16x64xf32>
    %258 = arith.mulf %257, %254 : vector<16x64xf32>
    %259 = arith.mulf %258, %254 : vector<16x64xf32>
    %260 = arith.mulf %259, %254 : vector<16x64xf32>
    %261 = arith.addf %254, %260 : vector<16x64xf32>
    %cst_142 = arith.constant 0.797884583 : f32
    %262 = vector.broadcast %cst_142 : f32 to vector<16x64xf32>
    %263 = arith.mulf %262, %261 : vector<16x64xf32>
    %264 = math.tanh %263 : vector<16x64xf32>
    %cst_143 = arith.constant 1.000000e+00 : f32
    %265 = vector.broadcast %cst_143 : f32 to vector<16x64xf32>
    %266 = arith.addf %265, %264 : vector<16x64xf32>
    %267 = arith.mulf %256, %266 : vector<16x64xf32>
    %c1_i32_144 = arith.constant 1 : i32
    %c0_i32_145 = arith.constant 0 : i32
    %c0_i32_146 = arith.constant 0 : i32
    %268 = tpu.memref_slice %arg2[%c1_i32_144, %c0_i32_145, %c0_i32_146] : memref<2x64x512xf32, #tpu.memory_space<vmem>> -> memref<1x64x512xf32, #tpu.memory_space<vmem>>
    %269 = tpu.memref_squeeze %268 : memref<1x64x512xf32, #tpu.memory_space<vmem>> -> memref<64x512xf32, #tpu.memory_space<vmem>>
    %c0_147 = arith.constant 0 : index
    %c384_148 = arith.constant 384 : index
    %270 = vector.load %269[%c0_147, %c384_148] : memref<64x512xf32, #tpu.memory_space<vmem>>, vector<64x32xf32>
    %cst_149 = arith.constant dense<0.000000e+00> : vector<16x32xf32>
    %271 = tpu.matmul %267, %270, %cst_149 {dimension_numbers = #tpu.dot_dimension_numbers<[1], [0], [0], [1], [0, 0, 1, 1], [], []>} : vector<16x64xf32>, vector<64x32xf32>, vector<16x32xf32> -> vector<16x32xf32>
    %c1_i32_150 = arith.constant 1 : i32
    %c0_i32_151 = arith.constant 0 : i32
    %c0_i32_152 = arith.constant 0 : i32
    %272 = tpu.memref_slice %arg2[%c1_i32_150, %c0_i32_151, %c0_i32_152] : memref<2x64x512xf32, #tpu.memory_space<vmem>> -> memref<1x64x512xf32, #tpu.memory_space<vmem>>
    %273 = tpu.memref_squeeze %272 : memref<1x64x512xf32, #tpu.memory_space<vmem>> -> memref<64x512xf32, #tpu.memory_space<vmem>>
    %c37_153 = arith.constant 37 : index
    %c0_154 = arith.constant 0 : index
    %274 = vector.load %273[%c37_153, %c0_154] : memref<64x512xf32, #tpu.memory_space<vmem>>, vector<1x32xf32>
    %275 = vector.broadcast %274 : vector<1x32xf32> to vector<16x32xf32>
    %276 = arith.addf %271, %275 : vector<16x32xf32>
    %277 = arith.addf %276, %245 : vector<16x32xf32>
    %c1_i32_155 = arith.constant 1 : i32
    %c0_i32_156 = arith.constant 0 : i32
    %c0_i32_157 = arith.constant 0 : i32
    %278 = tpu.memref_slice %arg2[%c1_i32_155, %c0_i32_156, %c0_i32_157] : memref<2x64x512xf32, #tpu.memory_space<vmem>> -> memref<1x64x512xf32, #tpu.memory_space<vmem>>
    %279 = tpu.memref_squeeze %278 : memref<1x64x512xf32, #tpu.memory_space<vmem>> -> memref<64x512xf32, #tpu.memory_space<vmem>>
    %c38_158 = arith.constant 38 : index
    %c0_159 = arith.constant 0 : index
    %280 = vector.load %279[%c38_158, %c0_159] : memref<64x512xf32, #tpu.memory_space<vmem>>, vector<1x32xf32>
    %c1_i32_160 = arith.constant 1 : i32
    %c0_i32_161 = arith.constant 0 : i32
    %c0_i32_162 = arith.constant 0 : i32
    %281 = tpu.memref_slice %arg2[%c1_i32_160, %c0_i32_161, %c0_i32_162] : memref<2x64x512xf32, #tpu.memory_space<vmem>> -> memref<1x64x512xf32, #tpu.memory_space<vmem>>
    %282 = tpu.memref_squeeze %281 : memref<1x64x512xf32, #tpu.memory_space<vmem>> -> memref<64x512xf32, #tpu.memory_space<vmem>>
    %c39_163 = arith.constant 39 : index
    %c0_164 = arith.constant 0 : index
    %283 = vector.load %282[%c39_163, %c0_164] : memref<64x512xf32, #tpu.memory_space<vmem>>, vector<1x32xf32>
    %cst_165 = arith.constant dense<0.000000e+00> : vector<16xf32>
    %284 = vector.multi_reduction <add>, %277, %cst_165 [1] : vector<16x32xf32> to vector<16xf32>
    %285 = vector.shape_cast %284 : vector<16xf32> to vector<16x1xf32>
    %cst_166 = arith.constant 3.200000e+01 : f32
    %286 = vector.broadcast %cst_166 : f32 to vector<16x1xf32>
    %287 = arith.divf %285, %286 : vector<16x1xf32>
    %288 = arith.mulf %277, %277 : vector<16x32xf32>
    %cst_167 = arith.constant dense<0.000000e+00> : vector<16xf32>
    %289 = vector.multi_reduction <add>, %288, %cst_167 [1] : vector<16x32xf32> to vector<16xf32>
    %290 = vector.shape_cast %289 : vector<16xf32> to vector<16x1xf32>
    %cst_168 = arith.constant 3.200000e+01 : f32
    %291 = vector.broadcast %cst_168 : f32 to vector<16x1xf32>
    %292 = arith.divf %290, %291 : vector<16x1xf32>
    %293 = arith.mulf %287, %287 : vector<16x1xf32>
    %294 = arith.subf %292, %293 : vector<16x1xf32>
    %295 = vector.broadcast %287 : vector<16x1xf32> to vector<16x32xf32>
    %296 = arith.subf %277, %295 : vector<16x32xf32>
    %cst_169 = arith.constant 9.99999996E-13 : f32
    %297 = vector.broadcast %cst_169 : f32 to vector<16x1xf32>
    %298 = arith.addf %294, %297 : vector<16x1xf32>
    %299 = math.rsqrt %298 : vector<16x1xf32>
    %300 = vector.broadcast %299 : vector<16x1xf32> to vector<16x32xf32>
    %301 = arith.mulf %296, %300 : vector<16x32xf32>
    %302 = vector.broadcast %280 : vector<1x32xf32> to vector<16x32xf32>
    %303 = arith.mulf %301, %302 : vector<16x32xf32>
    %304 = vector.broadcast %283 : vector<1x32xf32> to vector<16x32xf32>
    %305 = arith.addf %303, %304 : vector<16x32xf32>
    %306 = vector.extract_strided_slice %305 {offsets = [0, 0], sizes = [1, 32], strides = [1, 1]} : vector<16x32xf32> to vector<1x32xf32>
    %307 = vector.extract_strided_slice %305 {offsets = [8, 0], sizes = [1, 32], strides = [1, 1]} : vector<16x32xf32> to vector<1x32xf32>
    %308 = tpu.concatenate %306, %307 in 0 : vector<1x32xf32>, vector<1x32xf32> -> vector<2x32xf32>
    %c0_170 = arith.constant 0 : index
    %c0_171 = arith.constant 0 : index
    %309 = vector.load %arg3[%c0_170, %c0_171] : memref<40x128xf32, #tpu.memory_space<vmem>>, vector<32x32xf32>
    %cst_172 = arith.constant dense<0.000000e+00> : vector<2x32xf32>
    %310 = tpu.matmul %308, %309, %cst_172 {dimension_numbers = #tpu.dot_dimension_numbers<[1], [0], [0], [1], [0, 0, 1, 1], [], []>} : vector<2x32xf32>, vector<32x32xf32>, vector<2x32xf32> -> vector<2x32xf32>
    %c34_173 = arith.constant 34 : index
    %c0_174 = arith.constant 0 : index
    %311 = vector.load %arg3[%c34_173, %c0_174] : memref<40x128xf32, #tpu.memory_space<vmem>>, vector<1x32xf32>
    %312 = vector.broadcast %311 : vector<1x32xf32> to vector<2x32xf32>
    %313 = arith.addf %310, %312 : vector<2x32xf32>
    %314 = math.tanh %313 : vector<2x32xf32>
    %c0_175 = arith.constant 0 : index
    %c64 = arith.constant 64 : index
    %315 = vector.load %arg3[%c0_175, %c64] : memref<40x128xf32, #tpu.memory_space<vmem>>, vector<32x2xf32>
    %cst_176 = arith.constant dense<0.000000e+00> : vector<2x2xf32>
    %316 = tpu.matmul %314, %315, %cst_176 {dimension_numbers = #tpu.dot_dimension_numbers<[1], [0], [0], [1], [0, 0, 1, 1], [], []>} : vector<2x32xf32>, vector<32x2xf32>, vector<2x2xf32> -> vector<2x2xf32>
    %c35_177 = arith.constant 35 : index
    %c0_178 = arith.constant 0 : index
    %317 = vector.load %arg3[%c35_177, %c0_178] : memref<40x128xf32, #tpu.memory_space<vmem>>, vector<1x2xf32>
    %318 = vector.broadcast %317 : vector<1x2xf32> to vector<2x2xf32>
    %319 = arith.addf %316, %318 : vector<2x2xf32>
    %c0_179 = arith.constant 0 : index
    %c0_180 = arith.constant 0 : index
    %320 = vector.load %arg4[%c0_179, %c0_180] : memref<2x2xf32, #tpu.memory_space<vmem>>, vector<2x2xf32>
    tpu.vector_store %arg4[%c0_179, %c0_180], %319 {strides = array<i32>} : memref<2x2xf32, #tpu.memory_space<vmem>>, vector<2x2xf32>,
    return
  }
}

</mosaic_0001>

<bundles_post_ra>
// kernel: bert_classifier_forward.1
= control target key start
LH: loop header
LB: loop body
LE: loop exit
PB: predicated region body
PF: predicated region fallthrough
CT: control target
= control target key end

     0   :  { %9 = vsyncpa [#allocation3], 0  ;;  %s1591_s0 = inlined_call_operand.vmem [shape: f32[16,32], index: 0, kind: input, shape index: {}]   ;;  %s1592_s1 = inlined_call_operand.vmem [shape: f32[16,16], index: 1, kind: input, shape index: {}]   ;;  %s1593_s2 = inlined_call_operand.hbm [shape: f32[2,64,512], index: 2, kind: input, shape index: {}]   ;;  %s1594_s3 = inlined_call_operand.vmem [shape: f32[40,128], index: 3, kind: input, shape index: {}]   ;;  %s1595_s4 = inlined_call_operand.hbm [shape: f32[2,2], index: 4, kind: output, shape index: {}]  }
   0x1   :  { %10 = vsyncpa [#allocation4], 0  ;;  %s19_s17 = sshll.u32 %s1593_s2, 4  ;;  %s1343_s18 = smov [#allocation2]   ;;  %s20_s17 = int_to_ptr.hbm [resolvable:$true] %s19_s17 }
   0x2   :  { %s21_s19 = sshll.u32 %s1343_s18, 4  ;;  %s1344_s20 = smov 512   ;;  %s22_s19 = int_to_ptr.vmem [resolvable:$true] %s21_s19 }
   0x3   :  { %s1345_s21 = smov 32  }
   0x4   :  { %27 = dma.hbm_to_vmem [thread:$0]  %s20_s17, 8192, %s22_s19, [#allocation3], %s1344_s20, %s1344_s20, %s1345_s21  }
   0x5   :  { %1339 = dma.done.wait [#allocation3], 8192  }
   0x6   :  { %1340 = vsyncadd [#allocation3], 4294959104  ;;  %vm40_vm0 = vcmask 261120   ;;  %v1385_v0 = vld [vmem:[%s1591_s0 + $0x8] sm:$0xff]  ;;  %v1390_v1 = vld [vmem:[%s1591_s0] sm:$0xff]  ;;  %v1346_v8 = vmov 32.0  }
   0x7   :  { %v44_v2 = vsel %vm40_vm0, %v1385_v0, 0.0  ;;  %v41_v3 = vsel %vm40_vm0, %v1390_v1, 0.0  ;;  %v57_v4 = vmul.f32 %v1385_v0, %v1385_v0  ;;  %v56_v5 = vmul.f32 %v1390_v1, %v1390_v1  ;;  %v105_v14 = vld [vmem:[#allocation2 + $0x60] sm:$0xff]  ;;  %s1347_s28 = smov 80   ;;  %s1348_s29 = smov 96  }
   0x8   :  { %45 = vadd.xlane.f32.xlu1 %v44_v2  ;;  %42 = vadd.xlane.f32.xlu0 %v41_v3  ;;  %1227 = vrcp.f32 %v1346_v8  ;;  %v104_v15 = vld [vmem:[#allocation2 + $0x40] sm:$0xff]  ;;  %s1349_s30 = smov 112   ;;  %vm142_vm8 = vcmask 130048   ;;  %v1448_v8 = vld [vmem:[%s1592_s1 + $0x8] sm:$0xff]  ;;  %s1351_s9 = smov 48   ;;  %vm488_vm15 = vcmask 523264  }
   0x9   :  { %v61_v6 = vsel %vm40_vm0, %v57_v4, 0.0  ;;  %v58_v7 = vsel %vm40_vm0, %v56_v5, 0.0  ;;  %125 = vmatpush.msra.mxu0 %v105_v14  ;;  %v103_v18 = vld [vmem:[#allocation2 + $0x20] sm:$0xff]  ;;  %s1352_s10 = smov 16   ;;  %s1353_s23 = smov [#allocation5]  }
   0xa   :  { %v102_v21 = vld [vmem:[#allocation2] sm:$0xff]  ;;  %s1128_s24 = sshll.u32 %s1353_s23, 4  ;;  %s1130_s2 = sshll.u32 %s1595_s4, 4  ;;  %s1129_s24 = int_to_ptr.vmem [resolvable:$true] %s1128_s24  ;;  %s1131_s2 = int_to_ptr.hbm [resolvable:$true] %s1130_s2 }
   0xb   :  { %126 = vmatpush.msra.mxu0 %v104_v15  ;;  %v1223_v46 = vld [vmem:[%s1594_s3 + $0x20] ss:$0 sm:$0xff]  ;;  %v1224_v49 = vld [vmem:[%s1594_s3 + $0x21] ss:$0 sm:$0xff] }
   0xc   :  { %v106_v57 = vld [vmem:[#allocation2 + $0x80] ss:$0 sm:$0xff] }
   0xd   :  { %127 = vmatpush.msra.mxu0 %v103_v18  ;;  %v1441_v4 = vld [vmem:[%s1592_s1] sm:$0xff]  ;;  %s1350_s1 = smov 64  }
   0xe   :  { %v1228_v9 = vpop.eup %1227 }
   0xf   :  { %v48_v10 = vmul.f32 32.0, %v1228_v9  ;;  %vm52_vm1 = vweird.f32 %v1228_v9  ;;  %128 = vmatpush.msra.mxu0 %v102_v21 }
  0x10   :  { %62 = vadd.xlane.f32.xlu1 %v61_v6  ;;  %59 = vadd.xlane.f32.xlu0 %v58_v7 }
  0x11   :  { %v49_v11 = vsub.f32 1.0, %v48_v10 }
  0x13   :  { %v50_v12 = vmul.f32 %v1228_v9, %v49_v11 }
  0x15   :  { %v51_v13 = vadd.f32 %v1228_v9, %v50_v12 }
  0x17   :  { %v1402_v19 = vsel %vm52_vm1, %v1228_v9, %v51_v13 }
  0x7b   :  { %v46_v16 = vpop.xlane.xlu1 %45  ;;  %v43_v17 = vpop.xlane.xlu0 %42 }
  0x7c   :  { %v55_v20 = vmul.f32 %v1402_v19, %v46_v16  ;;  %v54_v22 = vmul.f32 %v1402_v19, %v43_v17 }
  0x7e   :  { %v67_v23 = vmul.f32 %v55_v20, %v55_v20  ;;  %v66_v26 = vmul.f32 %v54_v22, %v54_v22  ;;  %v70_v45 = vsub.f32 %v1390_v1, %v54_v22  ;;  %v71_v51 = vsub.f32 %v1385_v0, %v55_v20 }
  0x83   :  { %v63_v24 = vpop.xlane.xlu1 %62  ;;  %v60_v25 = vpop.xlane.xlu0 %59 }
  0x84   :  { %v65_v27 = vmul.f32 %v63_v24, %v1402_v19  ;;  %v64_v28 = vmul.f32 %v60_v25, %v1402_v19 }
  0x86   :  { %v69_v29 = vsub.f32 %v65_v27, %v67_v23  ;;  %v68_v30 = vsub.f32 %v64_v28, %v66_v26 }
  0x88   :  { %v73_v31 = vadd.f32 1e-12, %v69_v29  ;;  %v72_v32 = vadd.f32 1e-12, %v68_v30 }
  0x8a   :  { %1229 = vrsqrt.f32 %v73_v31  ;;  %vm80_vm4 = vweird.f32 %v72_v32  ;;  %vm90_vm6 = vweird.f32 %v73_v31 }
  0x8b   :  { %1231 = vrsqrt.f32 %v72_v32 }
  0x90   :  { %v1230_v33 = vpop.eup %1229 }
  0x91   :  { %v1232_v34 = vpop.eup %1231  ;;  %v85_v35 = vmul.f32 %v1230_v33, %v73_v31  ;;  %vm91_vm3 = vweird.f32 %v1230_v33 }
  0x92   :  { %v75_v36 = vmul.f32 %v1232_v34, %v72_v32  ;;  %vm81_vm2 = vweird.f32 %v1232_v34  ;;  %vm92_vm7 = vmor %vm90_vm6, %vm91_vm3 }
  0x93   :  { %v86_v37 = vmul.f32 %v1230_v33, %v85_v35  ;;  %vm82_vm5 = vmor %vm80_vm4, %vm81_vm2 }
  0x94   :  { %v76_v38 = vmul.f32 %v1232_v34, %v75_v36 }
  0x95   :  { %v87_v39 = vmul.f32 0.5, %v86_v37 }
  0x96   :  { %v77_v40 = vmul.f32 0.5, %v76_v38 }
  0x97   :  { %v88_v41 = vsub.f32 1.5, %v87_v39 }
  0x98   :  { %v78_v42 = vsub.f32 1.5, %v77_v40 }
  0x99   :  { %v89_v43 = vmul.f32 %v1230_v33, %v88_v41 }
  0x9a   :  { %v79_v44 = vmul.f32 %v1232_v34, %v78_v42 }
  0x9b   :  { %v93_v50 = vsel %vm92_vm7, %v1230_v33, %v89_v43 }
  0x9c   :  { %v83_v47 = vsel %vm82_vm5, %v1232_v34, %v79_v44  ;;  %v95_v54 = vmul.f32 %v93_v50, %v71_v51 }
  0x9d   :  { %v94_v48 = vmul.f32 %v83_v47, %v70_v45 }
  0x9e   :  { %v98_v55 = vmul.f32 %v1223_v46, %v95_v54 }
  0x9f   :  { %v97_v52 = vmul.f32 %v1223_v46, %v94_v48 }
  0xa0   :  { %v1420_v56 = vadd.f32 %v1224_v49, %v98_v55 }
  0xa1   :  { %v1416_v53 = vadd.f32 %v1224_v49, %v97_v52 }
  0xa3   :  { %1140 = vmatmul.msk.f32.vlgmr.msra.gmra.mxu0 %vm40_vm0, %v1416_v53 }
  0xab   :  { %1141 = vmatmul.msk.f32.gmra.mxu0 %vm40_vm0, %v1420_v56 }
 0x120   :  { %v130_v58 = vpop.f32.mrf.mxu0 }
 0x121   :  { %v131_v59 = vadd.f32 %v130_v58, %v106_v57 }
 0x123   :  { %235 = vrot.lane.b32.xlu1 %v131_v59, %s1347_s28 }
 0x128   :  { %v133_v60 = vpop.f32.mrf.mxu0 }
 0x129   :  { %v134_v61 = vadd.f32 %v133_v60, %v106_v57 }
 0x12b   :  { %237 = vrot.lane.b32.xlu0 %v134_v61, %s1347_s28  ;;  %140 = vrot.lane.b32.xlu2 %v134_v61, %s1348_s29  ;;  %v1193_v18 = vpack.i.bf16 %v131_v59, %v134_v61 }
 0x133   :  { %138 = vrot.lane.b32.xlu2 %v131_v59, %s1348_s29 }
 0x13b   :  { %231 = vrot.lane.b32.xlu2 %v131_v59, %s1349_s30 }
 0x143   :  { %233 = vrot.lane.b32.xlu2 %v134_v61, %s1349_s30 }
 0x185   :  { %v141_v62 = vpop.permute.xlu2 %140 }
 0x186   :  { %1142 = vmatpush.xpose.msk.msra.mxu1 %vm142_vm8, %v141_v62 }
 0x18d   :  { %v139_v63 = vpop.permute.xlu2 %138 }
 0x18e   :  { %1143 = vmatpush.xpose.msk.msra.mxu1 %vm142_vm8, %v139_v63 }
 0x191   :  { %1144 = vmatmul.msk.f32.vlgmr.msra.gmra.mxu1 %vm142_vm8, %v131_v59 }
 0x195   :  { %v236_v1 = vpop.permute.xlu1 %235  ;;  %v232_v2 = vpop.permute.xlu2 %231 }
 0x199   :  { %1145 = vmatmul.msk.f32.gmra.mxu1 %vm142_vm8, %v134_v61 }
 0x19d   :  { %v238_v0 = vpop.permute.xlu0 %237  ;;  %v234_v3 = vpop.permute.xlu2 %233 }
 0x19e   :  { %1148 = vmatpush.xpose.msk.msra.mxu3 %vm142_vm8, %v238_v0  ;;  %v340_v0 = vld [vmem:[#allocation2 + $0x68] sm:$0xff] }
 0x19f   :  { %360 = vmatpush.msrb.mxu0 %v340_v0 }
 0x1a2   :  { %1149 = vmatpush.xpose.msk.msra.mxu3 %vm142_vm8, %v236_v1  ;;  %v339_v1 = vld [vmem:[#allocation2 + $0x48] sm:$0xff] }
 0x1a3   :  { %361 = vmatpush.msrb.mxu0 %v339_v1 }
 0x1a5   :  { %1150 = vmatmul.msk.f32.vlgmr.msra.gmra.mxu3 %vm142_vm8, %v232_v2  ;;  %v338_v2 = vld [vmem:[#allocation2 + $0x28] sm:$0xff] }
 0x1a6   :  { %362 = vmatpush.msrb.mxu0 %v338_v2  ;;  %v486_v2 = vld [vmem:[#allocation2 + $0xf8] sm:$0xff] }
 0x1a7   :  { %503 = vmatpush.msrb.mxu3 %v486_v2 }
 0x1ad   :  { %1151 = vmatmul.msk.f32.gmra.mxu3 %vm142_vm8, %v234_v3  ;;  %v337_v3 = vld [vmem:[#allocation2 + $0x8] sm:$0xff] }
 0x1ae   :  { %363 = vmatpush.msrb.mxu0 %v337_v3  ;;  %v485_v3 = vld [vmem:[#allocation2 + $0xd8] sm:$0xff] }
 0x1af   :  { %504 = vmatpush.msrb.mxu3 %v485_v3 }
 0x20e   :  { %v168_v5 = vpop.f32.mrf.mxu1 }
 0x20f   :  { %v169_v6 = vadd.f32 %v168_v5, %v1441_v4 }
 0x211   :  { %v174_v7 = vsel %vm142_vm8, %v169_v6, -inf }
 0x212   :  { %175 = vmax.xlane.f32.xlu2 %v174_v7 }
 0x216   :  { %v171_v9 = vpop.f32.mrf.mxu1 }
 0x217   :  { %v172_v10 = vadd.f32 %v171_v9, %v1448_v8 }
 0x219   :  { %v177_v11 = vsel %vm142_vm8, %v172_v10, -inf }
 0x21a   :  { %178 = vmax.xlane.f32.xlu0 %v177_v11 }
 0x228   :  { %v264_v12 = vpop.f32.mrf.mxu3 }
 0x229   :  { %v265_v13 = vadd.f32 %v264_v12, %v1441_v4 }
 0x22b   :  { %v270_v14 = vsel %vm142_vm8, %v265_v13, -inf }
 0x22c   :  { %271 = vmax.xlane.f32.xlu1 %v270_v14 }
 0x230   :  { %v267_v15 = vpop.f32.mrf.mxu3 }
 0x231   :  { %v268_v16 = vadd.f32 %v267_v15, %v1448_v8 }
 0x233   :  { %v273_v17 = vsel %vm142_vm8, %v268_v16, -inf }
 0x234   :  { %274 = vmax.xlane.f32.xlu2 %v273_v17 }
 0x24c   :  { %1194 = vrot.lane.b32.xlu2 %v1193_v18, %s1350_s1 }
 0x285   :  { %v176_v20 = vpop.xlane.xlu2 %175 }
 0x286   :  { %v180_v21 = vsub.f32 %v169_v6, %v176_v20 }
 0x288   :  { %v182_v22 = vmul.f32 1.442695, %v180_v21 }
 0x28a   :  { %1233 = vpow2.f32 %v182_v22 }
 0x28d   :  { %v179_v23 = vpop.xlane.xlu0 %178 }
 0x28e   :  { %v181_v24 = vsub.f32 %v172_v10, %v179_v23  ;;  %v341_v10 = vld [vmem:[#allocation2 + $0x81] ss:$0 sm:$0xff] }
 0x290   :  { %v1234_v25 = vpop.eup %1233  ;;  %v184_v26 = vmul.f32 1.442695, %v181_v24  ;;  %v430_v24 = vld [vmem:[#allocation2 + $0x70] sm:$0xff] }
 0x291   :  { %v186_v27 = vsel %vm142_vm8, %v1234_v25, 0.0  ;;  %450 = vmatpush.msrb.mxu1 %v430_v24 }
 0x292   :  { %1235 = vpow2.f32 %v184_v26  ;;  %187 = vadd.xlane.f32.xlu0 %v186_v27  ;;  %v427_v26 = vld [vmem:[#allocation2 + $0x10] sm:$0xff] }
 0x298   :  { %v1236_v28 = vpop.eup %1235 }
 0x299   :  { %v189_v29 = vsel %vm142_vm8, %v1236_v28, 0.0 }
 0x29a   :  { %190 = vadd.xlane.f32.xlu1 %v189_v29 }
 0x29f   :  { %v272_v30 = vpop.xlane.xlu1 %271 }
 0x2a0   :  { %v276_v31 = vsub.f32 %v265_v13, %v272_v30 }
 0x2a2   :  { %v278_v32 = vmul.f32 1.442695, %v276_v31 }
 0x2a4   :  { %1237 = vpow2.f32 %v278_v32 }
 0x2a7   :  { %v275_v33 = vpop.xlane.xlu2 %274 }
 0x2a8   :  { %v277_v34 = vsub.f32 %v268_v16, %v275_v33 }
 0x2aa   :  { %v1238_v35 = vpop.eup %1237  ;;  %v280_v36 = vmul.f32 1.442695, %v277_v34 }
 0x2ab   :  { %v282_v37 = vsel %vm142_vm8, %v1238_v35, 0.0 }
 0x2ac   :  { %1239 = vpow2.f32 %v280_v36  ;;  %283 = vadd.xlane.f32.xlu0 %v282_v37 }
 0x2af   :  { %v1195_v38 = vpop.permute.xlu2 %1194 }
 0x2b0   :  { %v1196_v39 = vunpack.i.l.bf16 %v1195_v38  ;;  %v1197_v41 = vunpack.i.h.bf16 %v1195_v38 }
 0x2b2   :  { %v1240_v40 = vpop.eup %1239  ;;  %222 = vmatpush.msra.mxu2 %v1196_v39 }
 0x2b3   :  { %1199 = vrot.lane.b32.xlu1 %v1193_v18, %s1351_s9  ;;  %v285_v42 = vsel %vm142_vm8, %v1240_v40, 0.0 }
 0x2b4   :  { %286 = vadd.xlane.f32.xlu0 %v285_v42  ;;  %223 = vmatpush.msra.mxu2 %v1197_v41 }
 0x305   :  { %v188_v43 = vpop.xlane.xlu0 %187 }
 0x306   :  { %1241 = vrcp.f32 %v188_v43 }
 0x30c   :  { %v1242_v44 = vpop.eup %1241 }
 0x30d   :  { %v191_v45 = vpop.xlane.xlu1 %190  ;;  %v194_v46 = vmul.f32 %v1242_v44, %v1234_v25  ;;  %v428_v25 = vld [vmem:[#allocation2 + $0x30] sm:$0xff] }
 0x30e   :  { %1243 = vrcp.f32 %v191_v45 }
 0x30f   :  { %1146 = vmatmul.msk.f32.vlgmr.msra.gmra.mxu2 %vm142_vm8, %v194_v46 }
 0x314   :  { %v1244_v47 = vpop.eup %1243 }
 0x315   :  { %v195_v48 = vmul.f32 %v1244_v47, %v1236_v28 }
 0x317   :  { %1147 = vmatmul.msk.f32.gmra.mxu2 %vm142_vm8, %v195_v48 }
 0x31f   :  { %v284_v49 = vpop.xlane.xlu0 %283 }
 0x320   :  { %1245 = vrcp.f32 %v284_v49 }
 0x325   :  { %v1200_v50 = vpop.permute.xlu1 %1199 }
 0x326   :  { %v1246_v51 = vpop.eup %1245  ;;  %v1201_v52 = vunpack.i.l.bf16 %v1200_v50  ;;  %v1202_v55 = vunpack.i.h.bf16 %v1200_v50 }
 0x327   :  { %v287_v54 = vpop.xlane.xlu0 %286  ;;  %v290_v57 = vmul.f32 %v1246_v51, %v1238_v35  ;;  %v373_v51 = vld [vmem:[#allocation2 + $0x82] ss:$0 sm:$0xff] }
 0x328   :  { %1247 = vrcp.f32 %v287_v54  ;;  %318 = vmatpush.msrb.mxu2 %v1201_v52 }
 0x32a   :  { %319 = vmatpush.msrb.mxu2 %v1202_v55  ;;  %v374_v55 = vld [vmem:[#allocation2 + $0x83] ss:$0 sm:$0xff] }
 0x32b   :  { %1152 = vmatmul.msk.f32.vlgmr.msrb.gmra.mxu2 %vm142_vm8, %v290_v57 }
 0x32e   :  { %v1248_v58 = vpop.eup %1247 }
 0x32f   :  { %v291_v59 = vmul.f32 %v1248_v58, %v1240_v40 }
 0x333   :  { %1153 = vmatmul.msk.f32.gmra.mxu2 %vm142_vm8, %v291_v59 }
 0x392   :  { %v225_v60 = vpop.f32.mrf.mxu2 }
 0x39a   :  { %v228_v61 = vpop.f32.mrf.mxu2 }
 0x3ae   :  { %v321_v62 = vpop.f32.mrf.mxu2 }
 0x3af   :  { %329 = vrot.lane.b32.xlu0 %v321_v62, %s1352_s10 }
 0x3b6   :  { %v324_v63 = vpop.f32.mrf.mxu2 }
 0x3b7   :  { %331 = vrot.lane.b32.xlu2 %v324_v63, %s1352_s10 }
 0x411   :  { %v332_v7 = vpop.permute.xlu2 %331 }
 0x412   :  { %v336_v9 = vsel %vm142_vm8, %v228_v61, %v332_v7  ;;  %v482_v7 = vld [vmem:[#allocation2 + $0x78] sm:$0xff] }
 0x421   :  { %v330_v5 = vpop.permute.xlu0 %329 }
 0x422   :  { %v335_v6 = vsel %vm142_vm8, %v225_v60, %v330_v5  ;;  %v484_v5 = vld [vmem:[#allocation2 + $0xb8] sm:$0xff] }
 0x423   :  { %1154 = vmatmul.msk.f32.vlgmr.msrb.gmra.mxu0 %vm40_vm0, %v335_v6  ;;  %v483_v6 = vld [vmem:[#allocation2 + $0x98] sm:$0xff]  ;;  %505 = vmatpush.msrb.mxu3 %v484_v5 }
 0x425   :  { %506 = vmatpush.msrb.mxu3 %v483_v6 }
 0x427   :  { %507 = vmatpush.msrb.mxu3 %v482_v7 }
 0x42b   :  { %1155 = vmatmul.msk.f32.gmra.mxu0 %vm40_vm0, %v336_v9  ;;  %v481_v9 = vld [vmem:[#allocation2 + $0x58] sm:$0xff] }
 0x42c   :  { %508 = vmatpush.msrb.mxu3 %v481_v9 }
 0x4a0   :  { %v365_v11 = vpop.f32.mrf.mxu0 }
 0x4a1   :  { %v366_v12 = vadd.f32 %v365_v11, %v341_v10  ;;  %v479_v11 = vld [vmem:[#allocation2 + $0x18] sm:$0xff] }
 0x4a3   :  { %v371_v13 = vadd.f32 %v366_v12, %v1416_v53  ;;  %v429_v53 = vld [vmem:[#allocation2 + $0x50] sm:$0xff]  ;;  %v431_v12 = vld [vmem:[#allocation2 + $0x84] ss:$0 sm:$0xff] }
 0x4a4   :  { %451 = vmatpush.msrb.mxu1 %v429_v53 }
 0x4a5   :  { %v375_v14 = vsel %vm40_vm0, %v371_v13, 0.0  ;;  %v383_v15 = vmul.f32 %v371_v13, %v371_v13 }
 0x4a6   :  { %376 = vadd.xlane.f32.xlu2 %v375_v14  ;;  %452 = vmatpush.msrb.mxu1 %v428_v25 }
 0x4a7   :  { %v385_v16 = vsel %vm40_vm0, %v383_v15, 0.0 }
 0x4a8   :  { %386 = vadd.xlane.f32.xlu1 %v385_v16  ;;  %v368_v17 = vpop.f32.mrf.mxu0  ;;  %453 = vmatpush.msrb.mxu1 %v427_v26 }
 0x4a9   :  { %v369_v18 = vadd.f32 %v368_v17, %v341_v10  ;;  %v480_v10 = vld [vmem:[#allocation2 + $0x38] sm:$0xff] }
 0x4aa   :  { %509 = vmatpush.msrb.mxu3 %v480_v10 }
 0x4ab   :  { %v372_v20 = vadd.f32 %v369_v18, %v1420_v56 }
 0x4ac   :  { %510 = vmatpush.msrb.mxu3 %v479_v11 }
 0x4ad   :  { %v378_v21 = vsel %vm40_vm0, %v372_v20, 0.0  ;;  %v384_v22 = vmul.f32 %v372_v20, %v372_v20 }
 0x4ae   :  { %379 = vadd.xlane.f32.xlu0 %v378_v21 }
 0x4af   :  { %v388_v23 = vsel %vm40_vm0, %v384_v22, 0.0 }
 0x4b0   :  { %389 = vadd.xlane.f32.xlu2 %v388_v23 }
 0x519   :  { %v377_v27 = vpop.xlane.xlu2 %376 }
 0x51a   :  { %v381_v28 = vmul.f32 %v377_v27, %v1402_v19 }
 0x51b   :  { %v387_v29 = vpop.xlane.xlu1 %386 }
 0x51c   :  { %v393_v56 = vmul.f32 %v381_v28, %v381_v28  ;;  %v391_v30 = vmul.f32 %v387_v29, %v1402_v19  ;;  %v397_v48 = vsub.f32 %v371_v13, %v381_v28 }
 0x51e   :  { %v395_v31 = vsub.f32 %v391_v30, %v393_v56 }
 0x520   :  { %v399_v32 = vadd.f32 1e-12, %v395_v31 }
 0x521   :  { %v380_v33 = vpop.xlane.xlu0 %379 }
 0x522   :  { %1249 = vrsqrt.f32 %v399_v32  ;;  %v382_v34 = vmul.f32 %v380_v33, %v1402_v19  ;;  %vm407_vm10 = vweird.f32 %v399_v32 }
 0x523   :  { %v390_v35 = vpop.xlane.xlu2 %389 }
 0x524   :  { %v394_v36 = vmul.f32 %v382_v34, %v382_v34  ;;  %v392_v37 = vmul.f32 %v390_v35, %v1402_v19  ;;  %v398_v61 = vsub.f32 %v372_v20, %v382_v34  ;;  %v487_v34 = vld [vmem:[#allocation2 + $0x85] ss:$0 sm:$0xff] }
 0x526   :  { %v396_v38 = vsub.f32 %v392_v37, %v394_v36 }
 0x528   :  { %v1250_v39 = vpop.eup %1249  ;;  %v400_v40 = vadd.f32 1e-12, %v396_v38 }
 0x529   :  { %v402_v41 = vmul.f32 %v1250_v39, %v399_v32  ;;  %vm408_vm9 = vweird.f32 %v1250_v39 }
 0x52a   :  { %1251 = vrsqrt.f32 %v400_v40  ;;  %vm409_vm11 = vmor %vm407_vm10, %vm408_vm9  ;;  %vm417_vm13 = vweird.f32 %v400_v40 }
 0x52b   :  { %v403_v42 = vmul.f32 %v1250_v39, %v402_v41 }
 0x52d   :  { %v404_v43 = vmul.f32 0.5, %v403_v42 }
 0x52f   :  { %v405_v44 = vsub.f32 1.5, %v404_v43 }
 0x530   :  { %v1252_v45 = vpop.eup %1251 }
 0x531   :  { %v406_v46 = vmul.f32 %v1250_v39, %v405_v44  ;;  %v412_v47 = vmul.f32 %v1252_v45, %v400_v40  ;;  %vm418_vm12 = vweird.f32 %v1252_v45 }
 0x532   :  { %vm419_vm14 = vmor %vm417_vm13, %vm418_vm12 }
 0x533   :  { %v410_v49 = vsel %vm409_vm11, %v1250_v39, %v406_v46  ;;  %v413_v50 = vmul.f32 %v1252_v45, %v412_v47  ;;  %v578_v47 = vld [vmem:[#allocation2 + $0x160] sm:$0xff] }
 0x534   :  { %v421_v52 = vmul.f32 %v410_v49, %v397_v48  ;;  %598 = vmatpush.msra.mxu2 %v578_v47  ;;  %v577_v48 = vld [vmem:[#allocation2 + $0x140] sm:$0xff] }
 0x535   :  { %v414_v54 = vmul.f32 0.5, %v413_v50  ;;  %v576_v49 = vld [vmem:[#allocation2 + $0x120] sm:$0xff] }
 0x536   :  { %v423_v57 = vmul.f32 %v421_v52, %v373_v51  ;;  %599 = vmatpush.msra.mxu2 %v577_v48  ;;  %v575_v50 = vld [vmem:[#allocation2 + $0x100] sm:$0xff] }
 0x537   :  { %v415_v58 = vsub.f32 1.5, %v414_v54 }
 0x538   :  { %v425_v59 = vadd.f32 %v423_v57, %v374_v55  ;;  %600 = vmatpush.msra.mxu2 %v576_v49 }
 0x539   :  { %v416_v60 = vmul.f32 %v1252_v45, %v415_v58 }
 0x53a   :  { %1156 = vmatmul.msk.f32.vlgmr.msrb.gmra.mxu1 %vm40_vm0, %v425_v59  ;;  %601 = vmatpush.msra.mxu2 %v575_v50 }
 0x53b   :  { %v420_v62 = vsel %vm419_vm14, %v1252_v45, %v416_v60 }
 0x53c   :  { %v422_v63 = vmul.f32 %v420_v62, %v398_v61 }
 0x53e   :  { %v424_v0 = vmul.f32 %v422_v63, %v373_v51 }
 0x540   :  { %v426_v1 = vadd.f32 %v424_v0, %v374_v55 }
 0x542   :  { %1157 = vmatmul.msk.f32.gmra.mxu1 %vm40_vm0, %v426_v1 }
 0x5b7   :  { %v455_v13 = vpop.f32.mrf.mxu1 }
 0x5b8   :  { %v456_v14 = vadd.f32 %v455_v13, %v431_v12 }
 0x5ba   :  { %v463_v15 = vmul.f32 0.044715, %v456_v14  ;;  %v461_v28 = vmul.f32 0.5, %v456_v14 }
 0x5bc   :  { %v465_v16 = vmul.f32 %v463_v15, %v456_v14 }
 0x5be   :  { %v467_v17 = vmul.f32 %v465_v16, %v456_v14 }
 0x5bf   :  { %v458_v18 = vpop.f32.mrf.mxu1 }
 0x5c0   :  { %v459_v20 = vadd.f32 %v458_v18, %v431_v12  ;;  %v469_v21 = vadd.f32 %v467_v17, %v456_v14  ;;  %v520_v14 = vld [vmem:[#allocation2 + $0x86] ss:$0 sm:$0xff] }
 0x5c2   :  { %v464_v22 = vmul.f32 0.044715, %v459_v20  ;;  %v471_v23 = vmul.f32 0.7978846, %v469_v21  ;;  %v462_v31 = vmul.f32 0.5, %v459_v20 }
 0x5c4   :  { %1253 = vtanh.f32 %v471_v23  ;;  %v466_v24 = vmul.f32 %v464_v22, %v459_v20 }
 0x5c6   :  { %v468_v53 = vmul.f32 %v466_v24, %v459_v20 }
 0x5c8   :  { %v470_v25 = vadd.f32 %v468_v53, %v459_v20  ;;  %v521_v20 = vld [vmem:[#allocation2 + $0x87] ss:$0 sm:$0xff] }
 0x5ca   :  { %v1254_v26 = vpop.eup %1253  ;;  %v472_v27 = vmul.f32 0.7978846, %v470_v25 }
 0x5cb   :  { %v475_v29 = vadd.f32 1.0, %v1254_v26 }
 0x5cc   :  { %1255 = vtanh.f32 %v472_v27 }
 0x5cd   :  { %v477_v56 = vmul.f32 %v475_v29, %v461_v28  ;;  %v579_v29 = vld [vmem:[#allocation2 + $0x180] ss:$0 sm:$0xff] }
 0x5cf   :  { %1158 = vmatmul.msk.f32.vlgmr.msrb.gmra.mxu3 %vm488_vm15, %v477_v56 }
 0x5d2   :  { %v1256_v30 = vpop.eup %1255 }
 0x5d3   :  { %v476_v32 = vadd.f32 1.0, %v1256_v30 }
 0x5d5   :  { %v478_v33 = vmul.f32 %v476_v32, %v462_v31 }
 0x5d7   :  { %1159 = vmatmul.msk.f32.gmra.mxu3 %vm488_vm15, %v478_v33 }
 0x652   :  { %v512_v35 = vpop.f32.mrf.mxu3 }
 0x653   :  { %v513_v36 = vadd.f32 %v512_v35, %v487_v34 }
 0x655   :  { %v518_v37 = vadd.f32 %v513_v36, %v425_v59 }
 0x657   :  { %v522_v38 = vsel %vm40_vm0, %v518_v37, 0.0  ;;  %v530_v39 = vmul.f32 %v518_v37, %v518_v37 }
 0x658   :  { %523 = vadd.xlane.f32.xlu1 %v522_v38 }
 0x659   :  { %v532_v40 = vsel %vm40_vm0, %v530_v39, 0.0 }
 0x65a   :  { %533 = vadd.xlane.f32.xlu2 %v532_v40  ;;  %v515_v41 = vpop.f32.mrf.mxu3 }
 0x65b   :  { %v516_v42 = vadd.f32 %v515_v41, %v487_v34 }
 0x65d   :  { %v519_v43 = vadd.f32 %v516_v42, %v426_v1 }
 0x65f   :  { %v525_v44 = vsel %vm40_vm0, %v519_v43, 0.0  ;;  %v531_v45 = vmul.f32 %v519_v43, %v519_v43 }
 0x660   :  { %526 = vadd.xlane.f32.xlu0 %v525_v44 }
 0x661   :  { %v535_v46 = vsel %vm40_vm0, %v531_v45, 0.0 }
 0x662   :  { %536 = vadd.xlane.f32.xlu1 %v535_v46 }
 0x6cb   :  { %v524_v51 = vpop.xlane.xlu1 %523 }
 0x6cc   :  { %v528_v52 = vmul.f32 %v524_v51, %v1402_v19 }
 0x6cd   :  { %v534_v54 = vpop.xlane.xlu2 %533 }
 0x6ce   :  { %v540_v55 = vmul.f32 %v528_v52, %v528_v52  ;;  %v538_v57 = vmul.f32 %v534_v54, %v1402_v19  ;;  %v544_v13 = vsub.f32 %v518_v37, %v528_v52 }
 0x6d0   :  { %v542_v58 = vsub.f32 %v538_v57, %v540_v55 }
 0x6d2   :  { %v546_v59 = vadd.f32 1e-12, %v542_v58 }
 0x6d3   :  { %v527_v60 = vpop.xlane.xlu0 %526 }
 0x6d4   :  { %1257 = vrsqrt.f32 %v546_v59  ;;  %v529_v61 = vmul.f32 %v527_v60, %v1402_v19  ;;  %vm554_vm2 = vweird.f32 %v546_v59 }
 0x6d5   :  { %v537_v62 = vpop.xlane.xlu1 %536 }
 0x6d6   :  { %v541_v63 = vmul.f32 %v529_v61, %v529_v61  ;;  %v539_v0 = vmul.f32 %v537_v62, %v1402_v19  ;;  %v545_v53 = vsub.f32 %v519_v43, %v529_v61 }
 0x6d8   :  { %v543_v1 = vsub.f32 %v539_v0, %v541_v63 }
 0x6da   :  { %v1258_v2 = vpop.eup %1257  ;;  %v547_v3 = vadd.f32 1e-12, %v543_v1 }
 0x6db   :  { %v549_v5 = vmul.f32 %v1258_v2, %v546_v59  ;;  %vm555_vm1 = vweird.f32 %v1258_v2 }
 0x6dc   :  { %1259 = vrsqrt.f32 %v547_v3  ;;  %vm556_vm3 = vmor %vm554_vm2, %vm555_vm1  ;;  %vm564_vm5 = vweird.f32 %v547_v3 }
 0x6dd   :  { %v550_v6 = vmul.f32 %v1258_v2, %v549_v5 }
 0x6df   :  { %v551_v7 = vmul.f32 0.5, %v550_v6 }
 0x6e1   :  { %v552_v9 = vsub.f32 1.5, %v551_v7 }
 0x6e2   :  { %v1260_v10 = vpop.eup %1259 }
 0x6e3   :  { %v553_v11 = vmul.f32 %v1258_v2, %v552_v9  ;;  %v559_v12 = vmul.f32 %v1260_v10, %v547_v3  ;;  %vm565_vm4 = vweird.f32 %v1260_v10 }
 0x6e4   :  { %vm566_vm6 = vmor %vm564_vm5, %vm565_vm4  ;;  %vm1048_vm4 = vcmask 1040384   ;;  %vm1121_vm5 = vcmask 9216  }
 0x6e5   :  { %v557_v15 = vsel %vm556_vm3, %v1258_v2, %v553_v11  ;;  %v560_v16 = vmul.f32 %v1260_v10, %v559_v12 }
 0x6e6   :  { %v568_v17 = vmul.f32 %v557_v15, %v544_v13 }
 0x6e7   :  { %v561_v18 = vmul.f32 0.5, %v560_v16 }
 0x6e8   :  { %v570_v21 = vmul.f32 %v568_v17, %v520_v14 }
 0x6e9   :  { %v562_v22 = vsub.f32 1.5, %v561_v18 }
 0x6ea   :  { %v1494_v23 = vadd.f32 %v570_v21, %v521_v20 }
 0x6eb   :  { %v563_v24 = vmul.f32 %v1260_v10, %v562_v22 }
 0x6ec   :  { %1160 = vmatmul.msk.f32.vlgmr.msra.gmra.mxu2 %vm40_vm0, %v1494_v23 }
 0x6ed   :  { %v567_v25 = vsel %vm566_vm6, %v1260_v10, %v563_v24 }
 0x6ee   :  { %v569_v26 = vmul.f32 %v567_v25, %v545_v53 }
 0x6f0   :  { %v571_v27 = vmul.f32 %v569_v26, %v520_v14 }
 0x6f2   :  { %v1498_v28 = vadd.f32 %v571_v27, %v521_v20 }
 0x6f4   :  { %1161 = vmatmul.msk.f32.gmra.mxu2 %vm40_vm0, %v1498_v28 }
 0x76f   :  { %v603_v56 = vpop.f32.mrf.mxu2 }
 0x770   :  { %v604_v30 = vadd.f32 %v603_v56, %v579_v29  ;;  %v812_v56 = vld [vmem:[#allocation2 + $0x168] sm:$0xff] }
 0x772   :  { %703 = vrot.lane.b32.xlu1 %v604_v30, %s1349_s30  ;;  %707 = vrot.lane.b32.xlu0 %v604_v30, %s1347_s28 }
 0x777   :  { %v606_v31 = vpop.f32.mrf.mxu2 }
 0x778   :  { %v607_v32 = vadd.f32 %v606_v31, %v579_v29  ;;  %v810_v31 = vld [vmem:[#allocation2 + $0x128] sm:$0xff] }
 0x77a   :  { %709 = vrot.lane.b32.xlu2 %v607_v32, %s1347_s28  ;;  %611 = vrot.lane.b32.xlu1 %v604_v30, %s1348_s29  ;;  %v1203_v51 = vpack.i.bf16 %v604_v30, %v607_v32 }
 0x77b   :  { %705 = vrot.lane.b32.xlu0 %v607_v32, %s1349_s30 }
 0x782   :  { %613 = vrot.lane.b32.xlu2 %v607_v32, %s1348_s29 }
 0x7d4   :  { %v710_v33 = vpop.permute.xlu2 %709 }
 0x7d5   :  { %1168 = vmatpush.xpose.msk.msra.mxu3 %vm142_vm8, %v710_v33 }
 0x7dc   :  { %v614_v34 = vpop.permute.xlu2 %613 }
 0x7dd   :  { %1162 = vmatpush.xpose.msk.msra.mxu0 %vm142_vm8, %v614_v34  ;;  %v809_v34 = vld [vmem:[#allocation2 + $0x108] sm:$0xff] }
 0x7e4   :  { %v704_v35 = vpop.permute.xlu1 %703  ;;  %v708_v36 = vpop.permute.xlu0 %707 }
 0x7e5   :  { %1169 = vmatpush.xpose.msk.msra.mxu3 %vm142_vm8, %v708_v36 }
 0x7e8   :  { %1170 = vmatmul.msk.f32.vlgmr.msra.gmra.mxu3 %vm142_vm8, %v704_v35 }
 0x7ec   :  { %v612_v37 = vpop.permute.xlu1 %611 }
 0x7ed   :  { %1163 = vmatpush.xpose.msk.msra.mxu0 %vm142_vm8, %v612_v37  ;;  %v706_v38 = vpop.permute.xlu0 %705 }
 0x7f0   :  { %1164 = vmatmul.msk.f32.vlgmr.msra.gmra.mxu0 %vm142_vm8, %v604_v30  ;;  %1171 = vmatmul.msk.f32.gmra.mxu3 %vm142_vm8, %v706_v38  ;;  %v811_v30 = vld [vmem:[#allocation2 + $0x148] sm:$0xff] }
 0x7f1   :  { %832 = vmatpush.msrb.mxu0 %v812_v56 }
 0x7f3   :  { %833 = vmatpush.msrb.mxu0 %v811_v30 }
 0x7f5   :  { %834 = vmatpush.msrb.mxu0 %v810_v31 }
 0x7f7   :  { %835 = vmatpush.msrb.mxu0 %v809_v34  ;;  %v957_v34 = vld [vmem:[#allocation2 + $0x1d8] sm:$0xff] }
 0x7f8   :  { %1165 = vmatmul.msk.f32.gmra.mxu0 %vm142_vm8, %v607_v32 }
 0x86b   :  { %v736_v39 = vpop.f32.mrf.mxu3 }
 0x86c   :  { %v737_v40 = vadd.f32 %v736_v39, %v1441_v4 }
 0x86d   :  { %v640_v41 = vpop.f32.mrf.mxu0 }
 0x86e   :  { %v641_v42 = vadd.f32 %v640_v41, %v1441_v4  ;;  %v742_v43 = vsel %vm142_vm8, %v737_v40, -inf  ;;  %v813_v41 = vld [vmem:[#allocation2 + $0x181] ss:$0 sm:$0xff] }
 0x86f   :  { %743 = vmax.xlane.f32.xlu0 %v742_v43 }
 0x870   :  { %v646_v44 = vsel %vm142_vm8, %v641_v42, -inf }
 0x871   :  { %647 = vmax.xlane.f32.xlu1 %v646_v44 }
 0x873   :  { %v739_v45 = vpop.f32.mrf.mxu3 }
 0x874   :  { %v740_v46 = vadd.f32 %v739_v45, %v1448_v8 }
 0x875   :  { %v643_v48 = vpop.f32.mrf.mxu0 }
 0x876   :  { %v745_v47 = vsel %vm142_vm8, %v740_v46, -inf  ;;  %v644_v49 = vadd.f32 %v643_v48, %v1448_v8 }
 0x877   :  { %746 = vmax.xlane.f32.xlu2 %v745_v47 }
 0x878   :  { %v649_v50 = vsel %vm142_vm8, %v644_v49, -inf }
 0x87f   :  { %650 = vmax.xlane.f32.xlu2 %v649_v50 }
 0x88a   :  { %1204 = vrot.lane.b32.xlu1 %v1203_v51, %s1351_s9 }
 0x8e2   :  { %v744_v4 = vpop.xlane.xlu0 %743 }
 0x8e3   :  { %v748_v52 = vsub.f32 %v737_v40, %v744_v4 }
 0x8e4   :  { %v648_v54 = vpop.xlane.xlu1 %647 }
 0x8e5   :  { %v750_v55 = vmul.f32 1.442695, %v748_v52  ;;  %v652_v57 = vsub.f32 %v641_v42, %v648_v54  ;;  %v902_v54 = vld [vmem:[#allocation2 + $0x170] sm:$0xff] }
 0x8e7   :  { %1261 = vpow2.f32 %v750_v55  ;;  %v654_v58 = vmul.f32 1.442695, %v652_v57  ;;  %v900_v55 = vld [vmem:[#allocation2 + $0x130] sm:$0xff] }
 0x8e8   :  { %v899_v57 = vld [vmem:[#allocation2 + $0x110] sm:$0xff] }
 0x8e9   :  { %1263 = vpow2.f32 %v654_v58 }
 0x8ea   :  { %v747_v59 = vpop.xlane.xlu2 %746 }
 0x8eb   :  { %v749_v60 = vsub.f32 %v740_v46, %v747_v59 }
 0x8ed   :  { %v1262_v61 = vpop.eup %1261  ;;  %v752_v62 = vmul.f32 1.442695, %v749_v60 }
 0x8ee   :  { %v754_v8 = vsel %vm142_vm8, %v1262_v61, 0.0 }
 0x8ef   :  { %v1264_v63 = vpop.eup %1263  ;;  %1265 = vpow2.f32 %v752_v62  ;;  %755 = vadd.xlane.f32.xlu0 %v754_v8 }
 0x8f0   :  { %v658_v0 = vsel %vm142_vm8, %v1264_v63, 0.0 }
 0x8f1   :  { %659 = vadd.xlane.f32.xlu2 %v658_v0 }
 0x8f2   :  { %v651_v1 = vpop.xlane.xlu2 %650 }
 0x8f3   :  { %v653_v2 = vsub.f32 %v644_v49, %v651_v1 }
 0x8f5   :  { %v1266_v3 = vpop.eup %1265  ;;  %v656_v5 = vmul.f32 1.442695, %v653_v2 }
 0x8f6   :  { %v757_v6 = vsel %vm142_vm8, %v1266_v3, 0.0 }
 0x8f7   :  { %1267 = vpow2.f32 %v656_v5  ;;  %758 = vadd.xlane.f32.xlu0 %v757_v6 }
 0x8fc   :  { %v1205_v7 = vpop.permute.xlu1 %1204 }
 0x8fd   :  { %v1268_v9 = vpop.eup %1267  ;;  %v1206_v10 = vunpack.i.l.bf16 %v1205_v7  ;;  %v1207_v12 = vunpack.i.h.bf16 %v1205_v7  ;;  %v845_v7 = vld [vmem:[#allocation2 + $0x182] ss:$0 sm:$0xff] }
 0x8fe   :  { %v661_v11 = vsel %vm142_vm8, %v1268_v9, 0.0 }
 0x8ff   :  { %790 = vmatpush.msrb.mxu2 %v1206_v10  ;;  %662 = vadd.xlane.f32.xlu2 %v661_v11  ;;  %v846_v11 = vld [vmem:[#allocation2 + $0x183] ss:$0 sm:$0xff] }
 0x901   :  { %791 = vmatpush.msrb.mxu2 %v1207_v12 }
 0x90b   :  { %1209 = vrot.lane.b32.xlu0 %v1203_v51, %s1350_s1 }
 0x962   :  { %v756_v13 = vpop.xlane.xlu0 %755 }
 0x963   :  { %1269 = vrcp.f32 %v756_v13 }
 0x964   :  { %v660_v20 = vpop.xlane.xlu2 %659 }
 0x969   :  { %v1270_v14 = vpop.eup %1269 }
 0x96a   :  { %v762_v15 = vmul.f32 %v1270_v14, %v1262_v61  ;;  %v759_v16 = vpop.xlane.xlu0 %758 }
 0x96b   :  { %1271 = vrcp.f32 %v759_v16 }
 0x96c   :  { %1172 = vmatmul.msk.f32.vlgmr.msrb.gmra.mxu2 %vm142_vm8, %v762_v15  ;;  %1273 = vrcp.f32 %v660_v20 }
 0x971   :  { %v1272_v17 = vpop.eup %1271 }
 0x972   :  { %v763_v18 = vmul.f32 %v1272_v17, %v1266_v3  ;;  %v663_v21 = vpop.xlane.xlu2 %662  ;;  %v1274_v24 = vpop.eup %1273 }
 0x973   :  { %1275 = vrcp.f32 %v663_v21  ;;  %v666_v26 = vmul.f32 %v1274_v24, %v1264_v63 }
 0x974   :  { %1173 = vmatmul.msk.f32.gmra.mxu2 %vm142_vm8, %v763_v18 }
 0x979   :  { %v1276_v27 = vpop.eup %1275 }
 0x97a   :  { %v667_v29 = vmul.f32 %v1276_v27, %v1268_v9 }
 0x97d   :  { %v1210_v22 = vpop.permute.xlu0 %1209 }
 0x97e   :  { %v1211_v53 = vunpack.i.l.bf16 %v1210_v22  ;;  %v1212_v25 = vunpack.i.h.bf16 %v1210_v22 }
 0x980   :  { %694 = vmatpush.msra.mxu1 %v1211_v53 }
 0x982   :  { %695 = vmatpush.msra.mxu1 %v1212_v25 }
 0x983   :  { %1166 = vmatmul.msk.f32.vlgmr.msra.gmra.mxu1 %vm142_vm8, %v666_v26 }
 0x984   :  { %922 = vmatpush.msrb.mxu1 %v902_v54 }
 0x98b   :  { %1167 = vmatmul.msk.f32.gmra.mxu1 %vm142_vm8, %v667_v29 }
 0x9ef   :  { %v793_v32 = vpop.f32.mrf.mxu2 }
 0x9f0   :  { %801 = vrot.lane.b32.xlu2 %v793_v32, %s1352_s10 }
 0x9f7   :  { %v796_v33 = vpop.f32.mrf.mxu2 }
 0x9f8   :  { %803 = vrot.lane.b32.xlu1 %v796_v33, %s1352_s10  ;;  %v958_v33 = vld [vmem:[#allocation2 + $0x1f8] sm:$0xff] }
 0x9f9   :  { %974 = vmatpush.msrb.mxu3 %v958_v33 }
 0x9fb   :  { %975 = vmatpush.msrb.mxu3 %v957_v34 }
 0xa00   :  { %v697_v35 = vpop.f32.mrf.mxu1 }
 0xa08   :  { %v700_v38 = vpop.f32.mrf.mxu1 }
 0xa4a   :  { %v802_v36 = vpop.permute.xlu2 %801 }
 0xa4b   :  { %v807_v37 = vsel %vm142_vm8, %v697_v35, %v802_v36  ;;  %v956_v35 = vld [vmem:[#allocation2 + $0x1b8] sm:$0xff] }
 0xa4c   :  { %1174 = vmatmul.msk.f32.vlgmr.msrb.gmra.mxu0 %vm40_vm0, %v807_v37  ;;  %v955_v36 = vld [vmem:[#allocation2 + $0x198] sm:$0xff]  ;;  %976 = vmatpush.msrb.mxu3 %v956_v35 }
 0xa4d   :  { %v954_v37 = vld [vmem:[#allocation2 + $0x178] sm:$0xff] }
 0xa4e   :  { %977 = vmatpush.msrb.mxu3 %v955_v36 }
 0xa50   :  { %978 = vmatpush.msrb.mxu3 %v954_v37 }
 0xa6a   :  { %v804_v39 = vpop.permute.xlu1 %803 }
 0xa6b   :  { %v808_v40 = vsel %vm142_vm8, %v700_v38, %v804_v39  ;;  %v953_v38 = vld [vmem:[#allocation2 + $0x158] sm:$0xff] }
 0xa6c   :  { %1175 = vmatmul.msk.f32.gmra.mxu0 %vm40_vm0, %v808_v40  ;;  %v952_v39 = vld [vmem:[#allocation2 + $0x138] sm:$0xff]  ;;  %979 = vmatpush.msrb.mxu3 %v953_v38 }
 0xa6d   :  { %v951_v40 = vld [vmem:[#allocation2 + $0x118] sm:$0xff] }
 0xa6e   :  { %980 = vmatpush.msrb.mxu3 %v952_v39 }
 0xa70   :  { %981 = vmatpush.msrb.mxu3 %v951_v40 }
 0xac9   :  { %v837_v42 = vpop.f32.mrf.mxu0 }
 0xaca   :  { %v838_v43 = vadd.f32 %v837_v42, %v813_v41 }
 0xacc   :  { %v843_v44 = vadd.f32 %v838_v43, %v1494_v23  ;;  %v901_v23 = vld [vmem:[#allocation2 + $0x150] sm:$0xff] }
 0xacd   :  { %923 = vmatpush.msrb.mxu1 %v901_v23 }
 0xace   :  { %v847_v45 = vsel %vm40_vm0, %v843_v44, 0.0  ;;  %v855_v46 = vmul.f32 %v843_v44, %v843_v44 }
 0xacf   :  { %848 = vadd.xlane.f32.xlu0 %v847_v45  ;;  %924 = vmatpush.msrb.mxu1 %v900_v55 }
 0xad0   :  { %v857_v47 = vsel %vm40_vm0, %v855_v46, 0.0 }
 0xad1   :  { %858 = vadd.xlane.f32.xlu1 %v857_v47  ;;  %925 = vmatpush.msrb.mxu1 %v899_v57 }
 0xae9   :  { %v840_v48 = vpop.f32.mrf.mxu0 }
 0xaea   :  { %v841_v49 = vadd.f32 %v840_v48, %v813_v41  ;;  %v903_v41 = vld [vmem:[#allocation2 + $0x184] ss:$0 sm:$0xff] }
 0xaec   :  { %v844_v50 = vadd.f32 %v841_v49, %v1498_v28 }
 0xaee   :  { %v850_v51 = vsel %vm40_vm0, %v844_v50, 0.0  ;;  %v856_v4 = vmul.f32 %v844_v50, %v844_v50 }
 0xaef   :  { %851 = vadd.xlane.f32.xlu2 %v850_v51 }
 0xaf0   :  { %v860_v52 = vsel %vm40_vm0, %v856_v4, 0.0 }
 0xaf1   :  { %861 = vadd.xlane.f32.xlu0 %v860_v52 }
 0xb42   :  { %v849_v58 = vpop.xlane.xlu0 %848 }
 0xb43   :  { %v853_v59 = vmul.f32 %v849_v58, %v1402_v19 }
 0xb44   :  { %v859_v60 = vpop.xlane.xlu1 %858 }
 0xb45   :  { %v865_v28 = vmul.f32 %v853_v59, %v853_v59  ;;  %v863_v61 = vmul.f32 %v859_v60, %v1402_v19  ;;  %v869_v6 = vsub.f32 %v843_v44, %v853_v59 }
 0xb47   :  { %v867_v62 = vsub.f32 %v863_v61, %v865_v28 }
 0xb49   :  { %v871_v8 = vadd.f32 1e-12, %v867_v62 }
 0xb4b   :  { %1277 = vrsqrt.f32 %v871_v8  ;;  %vm879_vm8 = vweird.f32 %v871_v8 }
 0xb51   :  { %v1278_v63 = vpop.eup %1277 }
 0xb52   :  { %v874_v0 = vmul.f32 %v1278_v63, %v871_v8  ;;  %vm880_vm7 = vweird.f32 %v1278_v63  ;;  %v959_v8 = vld [vmem:[#allocation2 + $0x185] ss:$0 sm:$0xff] }
 0xb53   :  { %vm881_vm9 = vmor %vm879_vm8, %vm880_vm7 }
 0xb54   :  { %v875_v1 = vmul.f32 %v1278_v63, %v874_v0 }
 0xb56   :  { %v876_v2 = vmul.f32 0.5, %v875_v1 }
 0xb58   :  { %v877_v3 = vsub.f32 1.5, %v876_v2 }
 0xb5a   :  { %v878_v5 = vmul.f32 %v1278_v63, %v877_v3 }
 0xb5c   :  { %v882_v9 = vsel %vm881_vm9, %v1278_v63, %v878_v5 }
 0xb5d   :  { %v893_v10 = vmul.f32 %v882_v9, %v869_v6 }
 0xb5f   :  { %v895_v12 = vmul.f32 %v893_v10, %v845_v7 }
 0xb61   :  { %v1548_v13 = vadd.f32 %v895_v12, %v846_v11 }
 0xb62   :  { %v852_v14 = vpop.xlane.xlu2 %851 }
 0xb63   :  { %v854_v15 = vmul.f32 %v852_v14, %v1402_v19  ;;  %1176 = vmatmul.msk.f32.vlgmr.msrb.gmra.mxu1 %vm40_vm0, %v1548_v13 }
 0xb64   :  { %v862_v16 = vpop.xlane.xlu0 %861 }
 0xb65   :  { %v866_v17 = vmul.f32 %v854_v15, %v854_v15  ;;  %v864_v18 = vmul.f32 %v862_v16, %v1402_v19  ;;  %v870_v29 = vsub.f32 %v844_v50, %v854_v15 }
 0xb67   :  { %v868_v20 = vsub.f32 %v864_v18, %v866_v17 }
 0xb69   :  { %v872_v21 = vadd.f32 1e-12, %v868_v20 }
 0xb6b   :  { %1279 = vrsqrt.f32 %v872_v21  ;;  %vm889_vm11 = vweird.f32 %v872_v21 }
 0xb71   :  { %v1280_v22 = vpop.eup %1279 }
 0xb72   :  { %v884_v24 = vmul.f32 %v1280_v22, %v872_v21  ;;  %vm890_vm10 = vweird.f32 %v1280_v22 }
 0xb73   :  { %vm891_vm12 = vmor %vm889_vm11, %vm890_vm10 }
 0xb74   :  { %v885_v53 = vmul.f32 %v1280_v22, %v884_v24  ;;  %v1052_v24 = vld [vmem:[%s1594_s3 + $0x10] sm:$0xff] }
 0xb76   :  { %v886_v25 = vmul.f32 0.5, %v885_v53 }
 0xb78   :  { %v887_v26 = vsub.f32 1.5, %v886_v25  ;;  %v1051_v25 = vld [vmem:[%s1594_s3 + $0x8] sm:$0xff] }
 0xb7a   :  { %v888_v27 = vmul.f32 %v1280_v22, %v887_v26  ;;  %v1050_v26 = vld [vmem:[%s1594_s3] sm:$0xff] }
 0xb7c   :  { %v892_v56 = vsel %vm891_vm12, %v1280_v22, %v888_v27  ;;  %v1053_v22 = vld [vmem:[%s1594_s3 + $0x18] sm:$0xff]  ;;  %v1218_v27 = vpack.i.bf16 %v1050_v26, %v1051_v25 }
 0xb7d   :  { %v894_v30 = vmul.f32 %v892_v56, %v870_v29  ;;  %1071 = vmatpush.msra.mxu2 %v1053_v22  ;;  %v1213_v53 = vpack.i.bf16 %v1052_v24, %v1053_v22 }
 0xb7f   :  { %v896_v31 = vmul.f32 %v894_v30, %v845_v7  ;;  %1072 = vmatpush.msra.mxu2 %v1052_v24 }
 0xb81   :  { %v898_v32 = vadd.f32 %v896_v31, %v846_v11  ;;  %1073 = vmatpush.msra.mxu2 %v1051_v25 }
 0xb83   :  { %1177 = vmatmul.msk.f32.gmra.mxu1 %vm40_vm0, %v898_v32  ;;  %1074 = vmatpush.msra.mxu2 %v1050_v26 }
 0xbe0   :  { %v927_v42 = vpop.f32.mrf.mxu1 }
 0xbe1   :  { %v928_v43 = vadd.f32 %v927_v42, %v903_v41 }
 0xbe3   :  { %v935_v44 = vmul.f32 0.044715, %v928_v43  ;;  %v933_v50 = vmul.f32 0.5, %v928_v43 }
 0xbe5   :  { %v937_v45 = vmul.f32 %v935_v44, %v928_v43 }
 0xbe7   :  { %v939_v46 = vmul.f32 %v937_v45, %v928_v43 }
 0xbe9   :  { %v941_v47 = vadd.f32 %v939_v46, %v928_v43 }
 0xbeb   :  { %v943_v48 = vmul.f32 0.7978846, %v941_v47 }
 0xbed   :  { %1281 = vtanh.f32 %v943_v48 }
 0xbf3   :  { %v1282_v49 = vpop.eup %1281 }
 0xbf4   :  { %v947_v51 = vadd.f32 1.0, %v1282_v49 }
 0xbf6   :  { %v949_v4 = vmul.f32 %v947_v51, %v933_v50  ;;  %v991_v50 = vld [vmem:[#allocation2 + $0x186] ss:$0 sm:$0xff] }
 0xbf8   :  { %1178 = vmatmul.msk.f32.vlgmr.msrb.gmra.mxu3 %vm488_vm15, %v949_v4 }
 0xc00   :  { %v930_v52 = vpop.f32.mrf.mxu1 }
 0xc01   :  { %v931_v54 = vadd.f32 %v930_v52, %v903_v41 }
 0xc03   :  { %v936_v23 = vmul.f32 0.044715, %v931_v54  ;;  %v934_v28 = vmul.f32 0.5, %v931_v54 }
 0xc05   :  { %v938_v55 = vmul.f32 %v936_v23, %v931_v54 }
 0xc07   :  { %v940_v57 = vmul.f32 %v938_v55, %v931_v54 }
 0xc09   :  { %v942_v58 = vadd.f32 %v940_v57, %v931_v54  ;;  %v992_v54 = vld [vmem:[#allocation2 + $0x187] ss:$0 sm:$0xff] }
 0xc0b   :  { %v944_v59 = vmul.f32 0.7978846, %v942_v58 }
 0xc0d   :  { %1283 = vtanh.f32 %v944_v59 }
 0xc13   :  { %v1284_v60 = vpop.eup %1283 }
 0xc14   :  { %v948_v61 = vadd.f32 1.0, %v1284_v60 }
 0xc16   :  { %v950_v62 = vmul.f32 %v948_v61, %v934_v28 }
 0xc18   :  { %1179 = vmatmul.msk.f32.gmra.mxu3 %vm488_vm15, %v950_v62 }
 0xc7b   :  { %v983_v63 = vpop.f32.mrf.mxu3 }
 0xc7c   :  { %v984_v0 = vadd.f32 %v983_v63, %v959_v8  ;;  %v1225_v63 = vld [vmem:[%s1594_s3 + $0x22] ss:$0 sm:$0xff] }
 0xc7e   :  { %v989_v1 = vadd.f32 %v984_v0, %v1548_v13 }
 0xc80   :  { %v993_v2 = vsel %vm40_vm0, %v989_v1, 0.0  ;;  %v1001_v3 = vmul.f32 %v989_v1, %v989_v1 }
 0xc81   :  { %994 = vadd.xlane.f32.xlu0 %v993_v2 }
 0xc82   :  { %v1003_v5 = vsel %vm40_vm0, %v1001_v3, 0.0  ;;  %v1226_v3 = vld [vmem:[%s1594_s3 + $0x23] ss:$0 sm:$0xff] }
 0xc83   :  { %1004 = vadd.xlane.f32.xlu2 %v1003_v5 }
 0xc95   :  { %1214 = vrot.lane.b32.xlu0 %v1213_v53, %s1350_s1 }
 0xc9b   :  { %v986_v6 = vpop.f32.mrf.mxu3 }
 0xc9c   :  { %v987_v7 = vadd.f32 %v986_v6, %v959_v8 }
 0xc9e   :  { %v990_v9 = vadd.f32 %v987_v7, %v898_v32 }
 0xca0   :  { %v996_v10 = vsel %vm40_vm0, %v990_v9, 0.0  ;;  %v1002_v11 = vmul.f32 %v990_v9, %v990_v9 }
 0xca1   :  { %997 = vadd.xlane.f32.xlu1 %v996_v10 }
 0xca2   :  { %v1006_v12 = vsel %vm40_vm0, %v1002_v11, 0.0 }
 0xca9   :  { %1007 = vadd.xlane.f32.xlu1 %v1006_v12 }
 0xcc2   :  { %1219 = vrot.lane.b32.xlu1 %v1218_v27, %s1350_s1 }
 0xcf4   :  { %v995_v14 = vpop.xlane.xlu0 %994 }
 0xcf5   :  { %v999_v13 = vmul.f32 %v995_v14, %v1402_v19 }
 0xcf6   :  { %v1005_v15 = vpop.xlane.xlu2 %1004 }
 0xcf7   :  { %v1011_v16 = vmul.f32 %v999_v13, %v999_v13  ;;  %v1009_v17 = vmul.f32 %v1005_v15, %v1402_v19  ;;  %v1015_v46 = vsub.f32 %v989_v1, %v999_v13 }
 0xcf9   :  { %v1013_v18 = vsub.f32 %v1009_v17, %v1011_v16 }
 0xcfb   :  { %v1017_v20 = vadd.f32 1e-12, %v1013_v18 }
 0xcfd   :  { %1285 = vrsqrt.f32 %v1017_v20  ;;  %vm1025_vm14 = vweird.f32 %v1017_v20 }
 0xd03   :  { %v1286_v29 = vpop.eup %1285 }
 0xd04   :  { %v1020_v30 = vmul.f32 %v1286_v29, %v1017_v20  ;;  %vm1026_vm13 = vweird.f32 %v1286_v29 }
 0xd05   :  { %vm1027_vm15 = vmor %vm1025_vm14, %vm1026_vm13 }
 0xd06   :  { %v1021_v35 = vmul.f32 %v1286_v29, %v1020_v30 }
 0xd07   :  { %v1215_v59 = vpop.permute.xlu0 %1214 }
 0xd08   :  { %v1022_v37 = vmul.f32 0.5, %v1021_v35  ;;  %v1217_v60 = vunpack.i.h.bf16 %v1215_v59  ;;  %v1216_v28 = vunpack.i.l.bf16 %v1215_v59 }
 0xd0a   :  { %v1023_v38 = vsub.f32 1.5, %v1022_v37  ;;  %1113 = vmatpush.msra.mxu0 %v1216_v28 }
 0xd0c   :  { %v1024_v41 = vmul.f32 %v1286_v29, %v1023_v38  ;;  %1114 = vmatpush.msra.mxu0 %v1217_v60 }
 0xd0e   :  { %v1028_v44 = vsel %vm1027_vm15, %v1286_v29, %v1024_v41 }
 0xd14   :  { %v998_v21 = vpop.xlane.xlu1 %997 }
 0xd15   :  { %v1000_v56 = vmul.f32 %v998_v21, %v1402_v19 }
 0xd17   :  { %v1012_v32 = vmul.f32 %v1000_v56, %v1000_v56  ;;  %v1016_v48 = vsub.f32 %v990_v9, %v1000_v56 }
 0xd1c   :  { %v1008_v31 = vpop.xlane.xlu1 %1007 }
 0xd1d   :  { %v1010_v33 = vmul.f32 %v1008_v31, %v1402_v19  ;;  %v1039_v19 = vmul.f32 %v1028_v44, %v1015_v46 }
 0xd1f   :  { %v1014_v34 = vsub.f32 %v1010_v33, %v1012_v32  ;;  %v1041_v4 = vmul.f32 %v1039_v19, %v991_v50 }
 0xd21   :  { %v1018_v36 = vadd.f32 1e-12, %v1014_v34  ;;  %v1043_v55 = vadd.f32 %v1041_v4, %v992_v54 }
 0xd23   :  { %1287 = vrsqrt.f32 %v1018_v36  ;;  %vm1035_vm2 = vweird.f32 %v1018_v36 }
 0xd29   :  { %v1288_v39 = vpop.eup %1287 }
 0xd2a   :  { %v1030_v40 = vmul.f32 %v1288_v39, %v1018_v36  ;;  %vm1036_vm1 = vweird.f32 %v1288_v39 }
 0xd2b   :  { %vm1037_vm3 = vmor %vm1035_vm2, %vm1036_vm1 }
 0xd2c   :  { %v1031_v42 = vmul.f32 %v1288_v39, %v1030_v40 }
 0xd2e   :  { %v1032_v43 = vmul.f32 0.5, %v1031_v42 }
 0xd30   :  { %v1033_v45 = vsub.f32 1.5, %v1032_v43 }
 0xd32   :  { %v1034_v47 = vmul.f32 %v1288_v39, %v1033_v45 }
 0xd34   :  { %v1038_v49 = vsel %vm1037_vm3, %v1288_v39, %v1034_v47  ;;  %v1220_v61 = vpop.permute.xlu1 %1219 }
 0xd35   :  { %v1040_v51 = vmul.f32 %v1038_v49, %v1016_v48  ;;  %v1222_v62 = vunpack.i.h.bf16 %v1220_v61  ;;  %v1221_v8 = vunpack.i.l.bf16 %v1220_v61 }
 0xd37   :  { %v1042_v52 = vmul.f32 %v1040_v51, %v991_v50  ;;  %1115 = vmatpush.msra.mxu0 %v1221_v8 }
 0xd39   :  { %v1044_v23 = vadd.f32 %v1042_v52, %v992_v54  ;;  %1116 = vmatpush.msra.mxu0 %v1222_v62 }
 0xd3b   :  { %v1046_v57 = vrot.slane %v1044_v23, 7 }
 0xd3d   :  { %v1049_v58 = vsel %vm1048_vm4, %v1043_v55, %v1046_v57 }
 0xd3e   :  { %1180 = vmatmul.msk.f32.vlgmr.msra.gmra.mxu2 %vm40_vm0, %v1049_v58 }
 0xdc1   :  { %v1076_v0 = vpop.f32.mrf.mxu2 }
 0xdc2   :  { %v1077_v1 = vadd.f32 %v1225_v63, %v1076_v0 }
 0xdc4   :  { %1289 = vtanh.f32 %v1077_v1 }
 0xdca   :  { %v1290_v2 = vpop.eup %1289 }
 0xdcb   :  { %1181 = vmatmul.msk.f32.vlgmr.msra.gmra.mxu0 %vm40_vm0, %v1290_v2 }
 0xe48   :  { %v1118_v5 = vpop.f32.mrf.mxu0 }
 0xe49   :  { %v1119_v6 = vadd.f32 %v1226_v3, %v1118_v5 }
 0xe4b   :  { %1122 = vst.msk [vmem:[#allocation5] sm:$0x3] %vm1121_vm5, %v1119_v6 }
 0xe4c   :  { %1133 = dma.vmem_to_hbm [thread:$0]  %s1129_s24, 32, %s1131_s2, [#allocation4]  }
 0xe4d   :  { %1341 = dma.done.wait [#allocation4], 32  }
 0xe4e   :  { %1342 = vsyncadd [#allocation4], 4294967264 }
 0xe4f   :  { %1138 = vsyncpa [#allocation3], 1 }
 0xe50   :  { %1139 = vsyncpa [#allocation4], 1 }

</bundles_post_ra>
